<compile_context>
chip_gen: v5e
topology: v5e:2x2
jax: 0.10.0
libtpu: 0.0.40
codegen_flags: <defaults>
</compile_context>

<pallas_src>
import jax
import jax.numpy as jnp
from jax.experimental import pallas as pl
from jax.experimental.pallas import tpu as pltpu

# ---------------------------------------------------------------------------
# Problem sizes (z_dim=10, x_dim=1024, out_dim=1, matching the PyTorch module)
# ---------------------------------------------------------------------------
B = 8          # batch
X_DIM = 1024   # flattened input dim (e.g. 1x32x32 image)
Z_DIM = 10     # latent dim
H_DIM = 256    # discriminator hidden width (assumed; discriminator not given)
OUT_DIM = 1    # discriminator output dim (w3 fold below assumes OUT_DIM == 1)


def _infomax_kernel(x_ref, zb_ref,
                    w1x_ref, w1z_ref, b1_ref,
                    w2_ref, b2_ref, w3t_ref,
                    out_ref):
    """Compute -(mean(disc(x, z)) - mean(disc(x, z_perm))) in one fused pass.

    zb_ref = [z ; z_perm] stacked to (2B, Z_DIM).  The shared x @ W1x term is
    computed once and broadcast to both halves; both discriminator passes then
    run as a single (2B, .) pipeline.  b3 cancels in the mean difference and is
    dropped; the H->1 output matmul becomes a batch reduce + VPU dot with w3.
    """
    two_b = zb_ref.shape[0]
    b = two_b // 2

    # layer 1: concat([x, z]) @ W1 + b1 == x @ W1x + z @ W1z + b1 (concat-free)
    xw1 = jnp.dot(x_ref[...], w1x_ref[...],
                  preferred_element_type=jnp.float32)            # (B, H) f32, once
    xw1_2 = jnp.concatenate([xw1, xw1], axis=0)                  # (2B, H)
    zw1 = jnp.dot(zb_ref[...], w1z_ref[...],
                  preferred_element_type=jnp.float32)            # (2B, H)
    h1 = jnp.maximum(xw1_2 + zw1 + b1_ref[...], 0.0)             # f32 elementwise

    # layer 2 (bf16 MXU inputs, f32 accumulation, f32 bias/ReLU)
    h2 = jnp.dot(h1.astype(jnp.bfloat16), w2_ref[...],
                 preferred_element_type=jnp.float32) + b2_ref[...]
    h2 = jnp.maximum(h2, 0.0)                                    # (2B, H) f32

    # layer 3 folded into the loss:
    #   mean(d_xz) - mean(d_x_zp) = (sum_b (h2_xz - h2_xzp)) . w3 / B   (b3 cancels)
    delta = jnp.sum(h2[:b] - h2[b:], axis=0, keepdims=True)      # (1, H)
    loss = -jnp.sum(delta * w3t_ref[...], axis=(0, 1),
                    keepdims=True) / float(b * OUT_DIM)          # (1, 1)
    out_ref[...] = loss.astype(out_ref.dtype)


def infomax_loss(x_true, z, z_perm, params):
    """Wrapper calling the Pallas kernel.  Returns a (1, 1) float32 loss."""
    w1x, w1z, b1, w2, b2, w3, b3 = params
    del b3  # cancels exactly in mean(d_xz) - mean(d_x_zp)

    # bf16 for everything feeding the MXU; f32 for biases and the final reduce.
    x_bf = x_true.astype(jnp.bfloat16)
    zb_bf = jnp.concatenate([z, z_perm], axis=0).astype(jnp.bfloat16)
    w1x_bf = w1x.astype(jnp.bfloat16)
    w1z_bf = w1z.astype(jnp.bfloat16)
    w2_bf = w2.astype(jnp.bfloat16)
    w3t = jnp.transpose(w3).astype(jnp.float32)   # (OUT_DIM, H): lane-dense

    args = (x_bf, zb_bf, w1x_bf, w1z_bf, b1, w2_bf, b2, w3t)

    flops = (2 * B * X_DIM * H_DIM             # x @ W1x (computed once)
             + 2 * (2 * B) * Z_DIM * H_DIM     # z @ W1z
             + 2 * (2 * B) * H_DIM * H_DIM     # h1 @ W2
             + 6 * (2 * B) * H_DIM)            # bias / ReLU / reduction epilogue
    bytes_accessed = sum(int(a.size) * a.dtype.itemsize for a in args) + 4

    vmem = pl.BlockSpec(memory_space=pltpu.MemorySpace.VMEM)
    return pl.pallas_call(
        _infomax_kernel,
        out_shape=jax.ShapeDtypeStruct((1, 1), jnp.float32),
        in_specs=[vmem] * len(args),
        out_specs=vmem,
        cost_estimate=pl.CostEstimate(flops=flops, transcendentals=0,
                                      bytes_accessed=bytes_accessed),
        compiler_params=pltpu.CompilerParams(vmem_limit_bytes=32 * 1024 * 1024),
    )(*args)


def init_params(key):
    """Deterministic synthetic parameter init (PyTorch-Linear-like scaling)."""
    ks = jax.random.split(key, 7)

    def lin(k, fan_in, fan_out):
        bound = 1.0 / jnp.sqrt(fan_in)
        return jax.random.uniform(k, (fan_in, fan_out), jnp.float32, -bound, bound)

    w1x = lin(ks[0], X_DIM + Z_DIM, H_DIM)[:X_DIM]   # slice of concat-weight
    w1z = lin(ks[1], X_DIM + Z_DIM, H_DIM)[:Z_DIM]
    b1 = jax.random.uniform(ks[2], (1, H_DIM), jnp.float32,
                            -1.0 / jnp.sqrt(X_DIM + Z_DIM), 1.0 / jnp.sqrt(X_DIM + Z_DIM))
    w2 = lin(ks[3], H_DIM, H_DIM)
    b2 = jax.random.uniform(ks[4], (1, H_DIM), jnp.float32,
                            -1.0 / jnp.sqrt(H_DIM), 1.0 / jnp.sqrt(H_DIM))
    w3 = lin(ks[5], H_DIM, OUT_DIM)
    b3 = jax.random.uniform(ks[6], (1, OUT_DIM), jnp.float32,
                            -1.0 / jnp.sqrt(H_DIM), 1.0 / jnp.sqrt(H_DIM))
    return (w1x, w1z, b1, w2, b2, w3, b3)


def reference_loss_f32(x_true, z, z_perm, params):
    """Pure-JAX full-f32 reference (matches the original PyTorch math)."""
    w1x, w1z, b1, w2, b2, w3, b3 = params

    def disc(zz):
        h1 = jnp.maximum(x_true @ w1x + zz @ w1z + b1, 0.0)
        h2 = jnp.maximum(h1 @ w2 + b2, 0.0)
        return h2 @ w3 + b3

    return -(jnp.mean(disc(z)) - jnp.mean(disc(z_perm)))


def reference_loss_bf16(x_true, z, z_perm, params):
    """Pure-JAX reference with the same bf16-in / f32-accumulate math as the kernel."""
    w1x, w1z, b1, w2, b2, w3, b3 = params
    xb = x_true.astype(jnp.bfloat16)
    w1xb = w1x.astype(jnp.bfloat16)
    w1zb = w1z.astype(jnp.bfloat16)
    w2b = w2.astype(jnp.bfloat16)

    def disc(zz):
        h1 = jnp.maximum(
            jnp.dot(xb, w1xb, preferred_element_type=jnp.float32)
            + jnp.dot(zz.astype(jnp.bfloat16), w1zb, preferred_element_type=jnp.float32)
            + b1, 0.0)
        h2 = jnp.maximum(
            jnp.dot(h1.astype(jnp.bfloat16), w2b, preferred_element_type=jnp.float32)
            + b2, 0.0)
        return jnp.dot(h2, w3) + b3

    return -(jnp.mean(disc(z)) - jnp.mean(disc(z_perm)))


if __name__ == "__main__":
    key = jax.random.PRNGKey(0)
    k_x, k_z, k_p, k_params = jax.random.split(key, 4)

    x_true = jax.random.normal(k_x, (B, X_DIM), jnp.float32)
    z = jax.random.normal(k_z, (B, Z_DIM), jnp.float32)

    # TODO(synk): torch.randperm draws fresh host randomness every forward call;
    # mirrored with a fixed-key jax.random.permutation so the script is deterministic.
    perm = jax.random.permutation(k_p, B)
    z_perm = z[perm]

    params = init_params(k_params)

    loss = jax.block_until_ready(infomax_loss(x_true, z, z_perm, params))

    ref_bf = reference_loss_bf16(x_true, z, z_perm, params)   # same precision path
    ref_f32 = reference_loss_f32(x_true, z, z_perm, params)   # original f32 math
    assert jnp.allclose(loss[0, 0], ref_bf, atol=2e-3, rtol=2e-3), (loss, ref_bf)
    assert jnp.allclose(loss[0, 0], ref_f32, atol=3e-2, rtol=3e-2), (loss, ref_f32)

    print("KERNEL_OK")
</pallas_src>

<mosaic_0001>
module attributes {stable_mosaic.version = 11 : i64} {
  func.func @_infomax_kernel(%arg0: memref<8x1024xbf16, #tpu.memory_space<vmem>>, %arg1: memref<16x10xbf16, #tpu.memory_space<vmem>>, %arg2: memref<1024x256xbf16, #tpu.memory_space<vmem>>, %arg3: memref<10x256xbf16, #tpu.memory_space<vmem>>, %arg4: memref<1x256xf32, #tpu.memory_space<vmem>>, %arg5: memref<256x256xbf16, #tpu.memory_space<vmem>>, %arg6: memref<1x256xf32, #tpu.memory_space<vmem>>, %arg7: memref<1x256xf32, #tpu.memory_space<vmem>>, %arg8: memref<1x1xf32, #tpu.memory_space<vmem>>) attributes {dimension_semantics = [], scalar_prefetch = 0 : i64, scratch_operands = 0 : i64, tpu.core_type = #tpu.core_type<tc>} {
    %c0 = arith.constant 0 : index
    %c0_0 = arith.constant 0 : index
    %0 = vector.load %arg0[%c0, %c0_0] : memref<8x1024xbf16, #tpu.memory_space<vmem>>, vector<8x1024xbf16>
    %c0_1 = arith.constant 0 : index
    %c0_2 = arith.constant 0 : index
    %1 = vector.load %arg2[%c0_1, %c0_2] : memref<1024x256xbf16, #tpu.memory_space<vmem>>, vector<1024x256xbf16>
    %cst = arith.constant dense<0.000000e+00> : vector<8x256xf32>
    %2 = tpu.matmul %0, %1, %cst {dimension_numbers = #tpu.dot_dimension_numbers<[1], [0], [0], [1], [0, 0, 1, 1], [], []>} : vector<8x1024xbf16>, vector<1024x256xbf16>, vector<8x256xf32> -> vector<8x256xf32>
    %3 = tpu.concatenate %2, %2 in 0 : vector<8x256xf32>, vector<8x256xf32> -> vector<16x256xf32>
    %c0_3 = arith.constant 0 : index
    %c0_4 = arith.constant 0 : index
    %4 = vector.load %arg1[%c0_3, %c0_4] : memref<16x10xbf16, #tpu.memory_space<vmem>>, vector<16x10xbf16>
    %c0_5 = arith.constant 0 : index
    %c0_6 = arith.constant 0 : index
    %5 = vector.load %arg3[%c0_5, %c0_6] : memref<10x256xbf16, #tpu.memory_space<vmem>>, vector<10x256xbf16>
    %cst_7 = arith.constant dense<0.000000e+00> : vector<16x256xf32>
    %6 = tpu.matmul %4, %5, %cst_7 {dimension_numbers = #tpu.dot_dimension_numbers<[1], [0], [0], [1], [0, 0, 1, 1], [], []>} : vector<16x10xbf16>, vector<10x256xbf16>, vector<16x256xf32> -> vector<16x256xf32>
    %7 = arith.addf %3, %6 : vector<16x256xf32>
    %c0_8 = arith.constant 0 : index
    %c0_9 = arith.constant 0 : index
    %8 = vector.load %arg4[%c0_8, %c0_9] : memref<1x256xf32, #tpu.memory_space<vmem>>, vector<1x256xf32>
    %9 = vector.broadcast %8 : vector<1x256xf32> to vector<16x256xf32>
    %10 = arith.addf %7, %9 : vector<16x256xf32>
    %cst_10 = arith.constant 0.000000e+00 : f32
    %11 = vector.broadcast %cst_10 : f32 to vector<16x256xf32>
    %12 = arith.maximumf %10, %11 : vector<16x256xf32>
    %13 = arith.truncf %12 : vector<16x256xf32> to vector<16x256xbf16>
    %c0_11 = arith.constant 0 : index
    %c0_12 = arith.constant 0 : index
    %14 = vector.load %arg5[%c0_11, %c0_12] : memref<256x256xbf16, #tpu.memory_space<vmem>>, vector<256x256xbf16>
    %cst_13 = arith.constant dense<0.000000e+00> : vector<16x256xf32>
    %15 = tpu.matmul %13, %14, %cst_13 {dimension_numbers = #tpu.dot_dimension_numbers<[1], [0], [0], [1], [0, 0, 1, 1], [], []>} : vector<16x256xbf16>, vector<256x256xbf16>, vector<16x256xf32> -> vector<16x256xf32>
    %c0_14 = arith.constant 0 : index
    %c0_15 = arith.constant 0 : index
    %16 = vector.load %arg6[%c0_14, %c0_15] : memref<1x256xf32, #tpu.memory_space<vmem>>, vector<1x256xf32>
    %17 = vector.broadcast %16 : vector<1x256xf32> to vector<16x256xf32>
    %18 = arith.addf %15, %17 : vector<16x256xf32>
    %cst_16 = arith.constant 0.000000e+00 : f32
    %19 = vector.broadcast %cst_16 : f32 to vector<16x256xf32>
    %20 = arith.maximumf %18, %19 : vector<16x256xf32>
    %21 = vector.extract_strided_slice %20 {offsets = [0, 0], sizes = [8, 256], strides = [1, 1]} : vector<16x256xf32> to vector<8x256xf32>
    %22 = vector.extract_strided_slice %20 {offsets = [8, 0], sizes = [8, 256], strides = [1, 1]} : vector<16x256xf32> to vector<8x256xf32>
    %23 = arith.subf %21, %22 : vector<8x256xf32>
    %cst_17 = arith.constant dense<0.000000e+00> : vector<256xf32>
    %24 = vector.multi_reduction <add>, %23, %cst_17 [0] : vector<8x256xf32> to vector<256xf32>
    %25 = vector.shape_cast %24 : vector<256xf32> to vector<1x256xf32>
    %c0_18 = arith.constant 0 : index
    %c0_19 = arith.constant 0 : index
    %26 = vector.load %arg7[%c0_18, %c0_19] : memref<1x256xf32, #tpu.memory_space<vmem>>, vector<1x256xf32>
    %27 = arith.mulf %25, %26 : vector<1x256xf32>
    %28 = vector.shape_cast %27 : vector<1x256xf32> to vector<1x1x256xf32>
    %cst_20 = arith.constant dense<0.000000e+00> : vector<1xf32>
    %29 = vector.multi_reduction <add>, %28, %cst_20 [1, 2] : vector<1x1x256xf32> to vector<1xf32>
    %30 = vector.shape_cast %29 : vector<1xf32> to vector<1x1x1xf32>
    %31 = vector.extract %30[0, 0, 0] : f32 from vector<1x1x1xf32>
    %32 = vector.broadcast %31 : f32 to vector<1x1xf32>
    %cst_21 = arith.constant 0.000000e+00 : f32
    %33 = vector.broadcast %cst_21 : f32 to vector<1x1xf32>
    %34 = arith.subf %33, %32 : vector<1x1xf32>
    %cst_22 = arith.constant 8.000000e+00 : f32
    %35 = vector.broadcast %cst_22 : f32 to vector<1x1xf32>
    %36 = arith.divf %34, %35 : vector<1x1xf32>
    %c0_23 = arith.constant 0 : index
    %c0_24 = arith.constant 0 : index
    %37 = vector.load %arg8[%c0_23, %c0_24] : memref<1x1xf32, #tpu.memory_space<vmem>>, vector<1x1xf32>
    tpu.vector_store %arg8[%c0_23, %c0_24], %36 {strides = array<i32>} : memref<1x1xf32, #tpu.memory_space<vmem>>, vector<1x1xf32>,
    return
  }
}

</mosaic_0001>

<bundles_post_ra>
// kernel: tpu_custom_call.1
= control target key start
LH: loop header
LB: loop body
LE: loop exit
PB: predicated region body
PF: predicated region fallthrough
CT: control target
= control target key end

     0   :  { %13 = vsyncpa [#allocation3], 0  ;;  %s2630_s0 = inlined_call_operand.hbm [shape: bf16[8,1024], index: 0, kind: input, shape index: {}]   ;;  %s2631_s1 = inlined_call_operand.hbm [shape: bf16[16,10], index: 1, kind: input, shape index: {}]   ;;  %s2632_s2 = inlined_call_operand.hbm [shape: bf16[1024,256], index: 2, kind: input, shape index: {}]   ;;  %s2633_s3 = inlined_call_operand.hbm [shape: bf16[10,256], index: 3, kind: input, shape index: {}]   ;;  %s2634_s4 = inlined_call_operand.vmem [shape: f32[1,256], index: 4, kind: input, shape index: {}]   ;;  %s2635_s5 = inlined_call_operand.hbm [shape: bf16[256,256], index: 5, kind: input, shape index: {}]   ;;  %s2636_s6 = inlined_call_operand.vmem [shape: f32[1,256], index: 6, kind: input, shape index: {}]   ;;  %s2637_s7 = inlined_call_operand.vmem [shape: f32[1,256], index: 7, kind: input, shape index: {}]   ;;  %s2638_s8 = inlined_call_operand.hbm [shape: f32[1,1], index: 8, kind: output, shape index: {}]  }
   0x1   :  { %14 = vsyncpa [#allocation6], 0 }
   0x2   :  { %15 = vsyncpa [#allocation9], 0  ;;  %s32_s29 = sshll.u32 %s2631_s1, 4  ;;  %s33_s29 = int_to_ptr.hbm [resolvable:$true] %s32_s29 }
   0x3   :  { %16 = vsyncpa [#allocation4], 0  ;;  %s2499_s30 = smov [#allocation5]   ;;  %s2500_s10 = smov 64  }
   0x4   :  { %s34_s9 = sshll.u32 %s2499_s30, 4  ;;  %s2501_s11 = smov 4   ;;  %s35_s9 = int_to_ptr.vmem [resolvable:$true] %s34_s9 }
   0x5   :  { %40 = dma.hbm_to_vmem [thread:$0]  %s33_s29, 128, %s35_s9, [#allocation6], %s2500_s10, %s2500_s10, %s2501_s11  }
   0x6   :  { %s58_s14 = sshll.u32 %s2633_s3, 4  ;;  %s2502_s15 = smov [#allocation8]   ;;  %s59_s14 = int_to_ptr.hbm [resolvable:$true] %s58_s14 }
   0x7   :  { %s60_s16 = sshll.u32 %s2502_s15, 4  ;;  %s22_s19 = sshll.u32 %s2630_s0, 4  ;;  %s61_s16 = int_to_ptr.vmem [resolvable:$true] %s60_s16  ;;  %s23_s19 = int_to_ptr.hbm [resolvable:$true] %s22_s19 }
   0x8   :  { %s2503_s1 = smov 128   ;;  %s2504_s20 = smov 8  }
   0x9   :  { %66 = dma.hbm_to_vmem [thread:$0]  %s59_s14, 256, %s61_s16, [#allocation9], %s2503_s1, %s2503_s1, %s2504_s20  }
   0xa   :  { %s45_s23 = sshll.u32 %s2632_s2, 4  ;;  %s2505_s24 = smov [#allocation2]   ;;  %s46_s23 = int_to_ptr.hbm [resolvable:$true] %s45_s23 }
   0xb   :  { %s24_s25 = sshll.u32 %s2505_s24, 4  ;;  %s2506_s3 = smov [#allocation7]   ;;  %s25_s25 = int_to_ptr.vmem [resolvable:$true] %s24_s25 }
   0xc   :  { %27 = dma.hbm_to_vmem [thread:$0]  %s23_s19, 512, %s25_s25, [#allocation3]  }
   0xd   :  { %s47_s26 = sshll.u32 %s2506_s3, 4  ;;  %s73_s0 = sshll.u32 %s2635_s5, 4  ;;  %s48_s26 = int_to_ptr.vmem [resolvable:$true] %s47_s26  ;;  %s74_s0 = int_to_ptr.hbm [resolvable:$true] %s73_s0 }
   0xe   :  { %53 = dma.hbm_to_vmem [thread:$0]  %s46_s23, 16384, %s48_s26, [#allocation6], %s2503_s1, %s2503_s1, %s2504_s20  }
   0xf   :  { %s2507_s29 = smov [#allocation10]  }
  0x10   :  { %s75_s30 = sshll.u32 %s2507_s29, 4  ;;  %s76_s30 = int_to_ptr.vmem [resolvable:$true] %s75_s30 }
  0x11   :  { %81 = dma.hbm_to_vmem [thread:$0]  %s74_s0, 4096, %s76_s30, [#allocation9], %s2503_s1, %s2503_s1, %s2504_s20  }
  0x12   :  { %2491 = dma.done.wait [#allocation3], 512  }
  0x13   :  { %2492 = vsyncadd [#allocation3], 4294966784 }
  0x14   :  { %2493 = dma.done.wait [#allocation6], 16512  }
  0x15   :  { %2494 = vsyncadd [#allocation6], 4294950784 }
  0x16   :  { %2495 = dma.done.wait [#allocation9], 4352  }
  0x17   :  { %2496 = vsyncadd [#allocation9], 4294962944  ;;  %v1573_v0 = vld [vmem:[#allocation7 + $0x70] sm:$0xf]  ;;  %v2184_v1 = vld [vmem:[#allocation7 + $0x74] sm:$0xf0] }
  0x18   :  { %v1637_v2 = vld [vmem:[#allocation7 + $0xf0] sm:$0xf]  ;;  %v1574_v3 = vor.u32 %v2184_v1, %v1573_v0  ;;  %v2200_v4 = vld [vmem:[#allocation7 + $0xf4] sm:$0xf0]  ;;  %v1565_v11 = vld [vmem:[#allocation7 + $0x60] sm:$0xf] }
  0x19   :  { %v1701_v5 = vld [vmem:[#allocation7 + $0x170] sm:$0xf]  ;;  %v2216_v6 = vld [vmem:[#allocation7 + $0x174] sm:$0xf0]  ;;  %v1638_v7 = vor.u32 %v2200_v4, %v1637_v2  ;;  %v2182_v13 = vld [vmem:[#allocation7 + $0x64] sm:$0xf0] }
  0x1a   :  { %v1702_v8 = vor.u32 %v2216_v6, %v1701_v5  ;;  %v1765_v9 = vld [vmem:[#allocation7 + $0x1f0] sm:$0xf]  ;;  %v2232_v10 = vld [vmem:[#allocation7 + $0x1f4] sm:$0xf0]  ;;  %907 = vmatpush.bf16.msra.mxu0 %v1574_v3  ;;  %v1629_v14 = vld [vmem:[#allocation7 + $0xe0] sm:$0xf]  ;;  %v1566_v16 = vor.u32 %v2182_v13, %v1565_v11 }
  0x1b   :  { %v1766_v12 = vor.u32 %v2232_v10, %v1765_v9  ;;  %v2198_v15 = vld [vmem:[#allocation7 + $0xe4] sm:$0xf0]  ;;  %920 = vmatpush.bf16.msra.mxu1 %v1638_v7  ;;  %v1693_v18 = vld [vmem:[#allocation7 + $0x160] sm:$0xf]  ;;  %v1557_v23 = vld [vmem:[#allocation7 + $0x50] sm:$0xf] }
  0x1c   :  { %933 = vmatpush.bf16.msra.mxu2 %v1702_v8  ;;  %v1630_v17 = vor.u32 %v2198_v15, %v1629_v14  ;;  %v2214_v19 = vld [vmem:[#allocation7 + $0x164] sm:$0xf0]  ;;  %v1757_v20 = vld [vmem:[#allocation7 + $0x1e0] sm:$0xf]  ;;  %v2180_v24 = vld [vmem:[#allocation7 + $0x54] sm:$0xf0] }
  0x1d   :  { %946 = vmatpush.bf16.msra.mxu3 %v1766_v12  ;;  %v1694_v21 = vor.u32 %v2214_v19, %v1693_v18  ;;  %v2230_v22 = vld [vmem:[#allocation7 + $0x1e4] sm:$0xf0]  ;;  %v1621_v26 = vld [vmem:[#allocation7 + $0xd0] sm:$0xf]  ;;  %v2196_v27 = vld [vmem:[#allocation7 + $0xd4] sm:$0xf0]  ;;  %v1558_v29 = vor.u32 %v2180_v24, %v1557_v23 }
  0x1e   :  { %v1758_v25 = vor.u32 %v2230_v22, %v1757_v20  ;;  %v1685_v28 = vld [vmem:[#allocation7 + $0x150] sm:$0xf]  ;;  %908 = vmatpush.bf16.msra.mxu0 %v1566_v16  ;;  %v2212_v30 = vld [vmem:[#allocation7 + $0x154] sm:$0xf0]  ;;  %v1622_v33 = vor.u32 %v2196_v27, %v1621_v26  ;;  %v1549_v35 = vld [vmem:[#allocation7 + $0x40] sm:$0xf] }
  0x1f   :  { %v1749_v31 = vld [vmem:[#allocation7 + $0x1d0] sm:$0xf]  ;;  %v2228_v32 = vld [vmem:[#allocation7 + $0x1d4] sm:$0xf0]  ;;  %921 = vmatpush.bf16.msra.mxu1 %v1630_v17  ;;  %v1686_v34 = vor.u32 %v2212_v30, %v1685_v28  ;;  %v2178_v36 = vld [vmem:[#allocation7 + $0x44] sm:$0xf0] }
  0x20   :  { %934 = vmatpush.bf16.msra.mxu2 %v1694_v21  ;;  %v1613_v37 = vld [vmem:[#allocation7 + $0xc0] sm:$0xf]  ;;  %v1750_v38 = vor.u32 %v2228_v32, %v1749_v31  ;;  %v2194_v39 = vld [vmem:[#allocation7 + $0xc4] sm:$0xf0]  ;;  %v1550_v44 = vor.u32 %v2178_v36, %v1549_v35  ;;  %v1541_v47 = vld [vmem:[#allocation7 + $0x30] sm:$0xf] }
  0x21   :  { %947 = vmatpush.bf16.msra.mxu3 %v1758_v25  ;;  %v1677_v40 = vld [vmem:[#allocation7 + $0x140] sm:$0xf]  ;;  %v2210_v41 = vld [vmem:[#allocation7 + $0x144] sm:$0xf0]  ;;  %v1614_v45 = vor.u32 %v2194_v39, %v1613_v37  ;;  %v2176_v48 = vld [vmem:[#allocation7 + $0x34] sm:$0xf0] }
  0x22   :  { %v1741_v42 = vld [vmem:[#allocation7 + $0x1c0] sm:$0xf]  ;;  %v2226_v43 = vld [vmem:[#allocation7 + $0x1c4] sm:$0xf0]  ;;  %909 = vmatpush.bf16.msra.mxu0 %v1558_v29  ;;  %v1678_v46 = vor.u32 %v2210_v41, %v1677_v40  ;;  %v1605_v49 = vld [vmem:[#allocation7 + $0xb0] sm:$0xf]  ;;  %v1542_v56 = vor.u32 %v2176_v48, %v1541_v47 }
  0x23   :  { %922 = vmatpush.bf16.msra.mxu1 %v1622_v33  ;;  %v1742_v50 = vor.u32 %v2226_v43, %v1741_v42  ;;  %v2192_v51 = vld [vmem:[#allocation7 + $0xb4] sm:$0xf0]  ;;  %v1669_v52 = vld [vmem:[#allocation7 + $0x130] sm:$0xf]  ;;  %v1533_v59 = vld [vmem:[#allocation7 + $0x20] sm:$0xf] }
  0x24   :  { %935 = vmatpush.bf16.msra.mxu2 %v1686_v34  ;;  %v2208_v53 = vld [vmem:[#allocation7 + $0x134] sm:$0xf0]  ;;  %v1733_v54 = vld [vmem:[#allocation7 + $0x1b0] sm:$0xf]  ;;  %v1606_v57 = vor.u32 %v2192_v51, %v1605_v49  ;;  %v2174_v60 = vld [vmem:[#allocation7 + $0x24] sm:$0xf0] }
  0x25   :  { %948 = vmatpush.bf16.msra.mxu3 %v1750_v38  ;;  %v2224_v55 = vld [vmem:[#allocation7 + $0x1b4] sm:$0xf0]  ;;  %v1670_v58 = vor.u32 %v2208_v53, %v1669_v52  ;;  %v1597_v61 = vld [vmem:[#allocation7 + $0xa0] sm:$0xf]  ;;  %v2190_v63 = vld [vmem:[#allocation7 + $0xa4] sm:$0xf0]  ;;  %v1534_v4 = vor.u32 %v2174_v60, %v1533_v59 }
  0x26   :  { %910 = vmatpush.bf16.msra.mxu0 %v1550_v44  ;;  %v1734_v62 = vor.u32 %v2224_v55, %v1733_v54  ;;  %v1661_v0 = vld [vmem:[#allocation7 + $0x120] sm:$0xf]  ;;  %v2206_v1 = vld [vmem:[#allocation7 + $0x124] sm:$0xf0]  ;;  %v1598_v5 = vor.u32 %v2190_v63, %v1597_v61  ;;  %v1525_v7 = vld [vmem:[#allocation7 + $0x10] sm:$0xf] }
  0x27   :  { %923 = vmatpush.bf16.msra.mxu1 %v1614_v45  ;;  %v1725_v2 = vld [vmem:[#allocation7 + $0x1a0] sm:$0xf]  ;;  %v2222_v3 = vld [vmem:[#allocation7 + $0x1a4] sm:$0xf0]  ;;  %v1662_v6 = vor.u32 %v2206_v1, %v1661_v0  ;;  %v2172_v8 = vld [vmem:[#allocation7 + $0x14] sm:$0xf0] }
  0x28   :  { %936 = vmatpush.bf16.msra.mxu2 %v1678_v46  ;;  %v1589_v9 = vld [vmem:[#allocation7 + $0x90] sm:$0xf]  ;;  %v1726_v10 = vor.u32 %v2222_v3, %v1725_v2  ;;  %v2188_v11 = vld [vmem:[#allocation7 + $0x94] sm:$0xf0]  ;;  %v1526_v16 = vor.u32 %v2172_v8, %v1525_v7  ;;  %v1517_v17 = vld [vmem:[#allocation7] sm:$0xf] }
  0x29   :  { %949 = vmatpush.bf16.msra.mxu3 %v1742_v50  ;;  %v1653_v12 = vld [vmem:[#allocation7 + $0x110] sm:$0xf]  ;;  %v2204_v13 = vld [vmem:[#allocation7 + $0x114] sm:$0xf0]  ;;  %v2170_v18 = vld [vmem:[#allocation7 + $0x4] sm:$0xf0]  ;;  %v1590_v19 = vor.u32 %v2188_v11, %v1589_v9 }
  0x2a   :  { %911 = vmatpush.bf16.msra.mxu0 %v1542_v56  ;;  %v1717_v14 = vld [vmem:[#allocation7 + $0x190] sm:$0xf]  ;;  %v2220_v15 = vld [vmem:[#allocation7 + $0x194] sm:$0xf0]  ;;  %v1654_v20 = vor.u32 %v2204_v13, %v1653_v12  ;;  %v1581_v21 = vld [vmem:[#allocation7 + $0x80] sm:$0xf]  ;;  %v1518_v31 = vor.u32 %v2170_v18, %v1517_v17 }
  0x2b   :  { %924 = vmatpush.bf16.msra.mxu1 %v1606_v57  ;;  %v2186_v22 = vld [vmem:[#allocation7 + $0x84] sm:$0xf0]  ;;  %v1645_v23 = vld [vmem:[#allocation7 + $0x100] sm:$0xf]  ;;  %v1718_v24 = vor.u32 %v2220_v15, %v1717_v14  ;;  %v1829_v26 = vld [vmem:[#allocation7 + $0x270] sm:$0xf] }
  0x2c   :  { %937 = vmatpush.bf16.msra.mxu2 %v1670_v58  ;;  %v2202_v25 = vld [vmem:[#allocation7 + $0x104] sm:$0xf0]  ;;  %v2248_v27 = vld [vmem:[#allocation7 + $0x274] sm:$0xf0]  ;;  %v1893_v28 = vld [vmem:[#allocation7 + $0x2f0] sm:$0xf]  ;;  %v1582_v35 = vor.u32 %v2186_v22, %v1581_v21 }
  0x2d   :  { %950 = vmatpush.bf16.msra.mxu3 %v1734_v62  ;;  %v2264_v29 = vld [vmem:[#allocation7 + $0x2f4] sm:$0xf0]  ;;  %v1957_v30 = vld [vmem:[#allocation7 + $0x370] sm:$0xf]  ;;  %v1709_v33 = vld [vmem:[#allocation7 + $0x180] sm:$0xf]  ;;  %v1646_v36 = vor.u32 %v2202_v25, %v1645_v23  ;;  %v1830_v39 = vor.u32 %v2248_v27, %v1829_v26 }
  0x2e   :  { %912 = vmatpush.bf16.msra.mxu0 %v1534_v4  ;;  %v2280_v32 = vld [vmem:[#allocation7 + $0x374] sm:$0xf0]  ;;  %v2218_v34 = vld [vmem:[#allocation7 + $0x184] sm:$0xf0]  ;;  %v2021_v37 = vld [vmem:[#allocation7 + $0x3f0] sm:$0xf]  ;;  %v1894_v40 = vor.u32 %v2264_v29, %v1893_v28 }
  0x2f   :  { %925 = vmatpush.bf16.msra.mxu1 %v1598_v5  ;;  %v2296_v38 = vld [vmem:[#allocation7 + $0x3f4] sm:$0xf0]  ;;  %v1821_v41 = vld [vmem:[#allocation7 + $0x260] sm:$0xf]  ;;  %v1958_v42 = vor.u32 %v2280_v32, %v1957_v30  ;;  %v1710_v43 = vor.u32 %v2218_v34, %v1709_v33  ;;  %v2246_v44 = vld [vmem:[#allocation7 + $0x264] sm:$0xf0] }
  0x30   :  { %938 = vmatpush.bf16.msra.mxu2 %v1662_v6  ;;  %v1885_v45 = vld [vmem:[#allocation7 + $0x2e0] sm:$0xf]  ;;  %v2262_v46 = vld [vmem:[#allocation7 + $0x2e4] sm:$0xf0]  ;;  %v2022_v47 = vor.u32 %v2296_v38, %v2021_v37  ;;  %v1822_v52 = vor.u32 %v2246_v44, %v1821_v41  ;;  %v1813_v54 = vld [vmem:[#allocation7 + $0x250] sm:$0xf] }
  0x31   :  { %951 = vmatpush.bf16.msra.mxu3 %v1726_v10  ;;  %v1949_v48 = vld [vmem:[#allocation7 + $0x360] sm:$0xf]  ;;  %v2278_v49 = vld [vmem:[#allocation7 + $0x364] sm:$0xf0]  ;;  %v1886_v53 = vor.u32 %v2262_v46, %v1885_v45  ;;  %v2244_v55 = vld [vmem:[#allocation7 + $0x254] sm:$0xf0] }
  0x32   :  { %913 = vmatpush.bf16.msra.mxu0 %v1526_v16  ;;  %v2013_v50 = vld [vmem:[#allocation7 + $0x3e0] sm:$0xf]  ;;  %v2294_v51 = vld [vmem:[#allocation7 + $0x3e4] sm:$0xf0]  ;;  %v1950_v56 = vor.u32 %v2278_v49, %v1949_v48  ;;  %v1877_v57 = vld [vmem:[#allocation7 + $0x2d0] sm:$0xf]  ;;  %v1814_v2 = vor.u32 %v2244_v55, %v1813_v54 }
  0x33   :  { %926 = vmatpush.bf16.msra.mxu1 %v1590_v19  ;;  %v2260_v58 = vld [vmem:[#allocation7 + $0x2d4] sm:$0xf0]  ;;  %v108_v59 = vld [vmem:[#allocation2 + $0x8] sm:$0xff]  ;;  %v2014_v60 = vor.u32 %v2294_v51, %v2013_v50  ;;  %v1941_v61 = vld [vmem:[#allocation7 + $0x350] sm:$0xf]  ;;  %vm1136_vm0 = vcmask 1044480  }
  0x34   :  { %939 = vmatpush.bf16.msra.mxu2 %v1654_v20  ;;  %v2276_v62 = vld [vmem:[#allocation7 + $0x354] sm:$0xf0]  ;;  %v245_v63 = vunpack.c.l.b16 %v108_v59  ;;  %v246_v1 = vunpack.c.h.b16 %v108_v59  ;;  %v2005_v3 = vld [vmem:[#allocation7 + $0x3d0] sm:$0xf]  ;;  %v1878_v7 = vor.u32 %v2260_v58, %v1877_v57  ;;  %v1805_v8 = vld [vmem:[#allocation7 + $0x240] sm:$0xf] }
  0x35   :  { %952 = vmatpush.bf16.msra.mxu3 %v1718_v24  ;;  %v107_v0 = vld [vmem:[#allocation2] sm:$0xff]  ;;  %v1942_v11 = vor.u32 %v2276_v62, %v1941_v61  ;;  %v2242_v12 = vld [vmem:[#allocation7 + $0x244] sm:$0xf0]  ;;  %v1869_v13 = vld [vmem:[#allocation7 + $0x2c0] sm:$0xf]  ;;  %vm1132_vm1 = vcmask 80896  }
  0x36   :  { %914 = vmatpush.bf16.msra.mxu0 %v1518_v31  ;;  %v2292_v4 = vld [vmem:[#allocation7 + $0x3d4] sm:$0xf0]  ;;  %v243_v5 = vunpack.c.l.b16 %v107_v0  ;;  %v244_v6 = vunpack.c.h.b16 %v107_v0  ;;  %v2570_v9 = vpack.c.b16 %v245_v63, %v245_v63  ;;  %v2572_v10 = vpack.c.b16 %v246_v1, %v246_v1  ;;  %v2258_v14 = vld [vmem:[#allocation7 + $0x2c4] sm:$0xf0]  ;;  %v1933_v18 = vld [vmem:[#allocation7 + $0x340] sm:$0xf] }
  0x37   :  { %927 = vmatpush.bf16.msra.mxu1 %v1582_v35  ;;  %v2006_v17 = vor.u32 %v2292_v4, %v2005_v3  ;;  %v2274_v19 = vld [vmem:[#allocation7 + $0x344] sm:$0xf0]  ;;  %v1997_v20 = vld [vmem:[#allocation7 + $0x3c0] sm:$0xf]  ;;  %v1806_v22 = vor.u32 %v2242_v12, %v1805_v8  ;;  %v1870_v23 = vor.u32 %v2258_v14, %v1869_v13  ;;  %v1797_v24 = vld [vmem:[#allocation7 + $0x230] sm:$0xf] }
  0x38   :  { %940 = vmatpush.bf16.msra.mxu2 %v1646_v36  ;;  %v2574_v15 = vpack.c.b16 %v243_v5, %v243_v5  ;;  %v2576_v16 = vpack.c.b16 %v244_v6, %v244_v6  ;;  %v2290_v21 = vld [vmem:[#allocation7 + $0x3c4] sm:$0xf0]  ;;  %v1934_v25 = vor.u32 %v2274_v19, %v1933_v18  ;;  %v2240_v26 = vld [vmem:[#allocation7 + $0x234] sm:$0xf0]  ;;  %v1861_v27 = vld [vmem:[#allocation7 + $0x2b0] sm:$0xf] }
  0x39   :  { %953 = vmatpush.bf16.msra.mxu3 %v1710_v43  ;;  %v2256_v28 = vld [vmem:[#allocation7 + $0x2b4] sm:$0xf0]  ;;  %v1998_v29 = vor.u32 %v2290_v21, %v1997_v20  ;;  %v1925_v30 = vld [vmem:[#allocation7 + $0x330] sm:$0xf]  ;;  %v1798_v34 = vor.u32 %v2240_v26, %v1797_v24  ;;  %v1789_v36 = vld [vmem:[#allocation7 + $0x220] sm:$0xf] }
  0x3a   :  { %959 = vmatpush.bf16.msrb.mxu0 %v1830_v39  ;;  %928 = vmatmul.bf16.vlgmr.msra.gmra.mxu1 %v2576_v16  ;;  %v2272_v31 = vld [vmem:[#allocation7 + $0x334] sm:$0xf0]  ;;  %v1989_v32 = vld [vmem:[#allocation7 + $0x3b0] sm:$0xf]  ;;  %v1862_v35 = vor.u32 %v2256_v28, %v1861_v27  ;;  %v2238_v38 = vld [vmem:[#allocation7 + $0x224] sm:$0xf0] }
  0x3b   :  { %972 = vmatpush.bf16.msrb.mxu1 %v1894_v40  ;;  %941 = vmatmul.bf16.vlgmr.msra.gmra.mxu2 %v2570_v9  ;;  %v2288_v33 = vld [vmem:[#allocation7 + $0x3b4] sm:$0xf0]  ;;  %v1926_v37 = vor.u32 %v2272_v31, %v1925_v30  ;;  %v1853_v39 = vld [vmem:[#allocation7 + $0x2a0] sm:$0xf]  ;;  %v2254_v40 = vld [vmem:[#allocation7 + $0x2a4] sm:$0xf0]  ;;  %v1790_v46 = vor.u32 %v2238_v38, %v1789_v36 }
  0x3c   :  { %985 = vmatpush.bf16.msrb.mxu2 %v1958_v42  ;;  %915 = vmatmul.bf16.vlgmr.msra.gmra.mxu0 %v2574_v15  ;;  %v1990_v41 = vor.u32 %v2288_v33, %v1989_v32  ;;  %v1917_v42 = vld [vmem:[#allocation7 + $0x320] sm:$0xf]  ;;  %v2270_v43 = vld [vmem:[#allocation7 + $0x324] sm:$0xf0]  ;;  %v1781_v48 = vld [vmem:[#allocation7 + $0x210] sm:$0xf] }
  0x3d   :  { %998 = vmatpush.bf16.msrb.mxu3 %v2022_v47  ;;  %v1981_v44 = vld [vmem:[#allocation7 + $0x3a0] sm:$0xf]  ;;  %v2286_v45 = vld [vmem:[#allocation7 + $0x3a4] sm:$0xf0]  ;;  %v1854_v47 = vor.u32 %v2254_v40, %v1853_v39  ;;  %v1918_v49 = vor.u32 %v2270_v43, %v1917_v42  ;;  %v2236_v50 = vld [vmem:[#allocation7 + $0x214] sm:$0xf0] }
  0x3e   :  { %960 = vmatpush.bf16.msrb.mxu0 %v1822_v52  ;;  %954 = vmatmul.bf16.vlgmr.msra.gmra.mxu3 %v2572_v10  ;;  %v1845_v51 = vld [vmem:[#allocation7 + $0x290] sm:$0xf]  ;;  %v2252_v52 = vld [vmem:[#allocation7 + $0x294] sm:$0xf0]  ;;  %v1773_v58 = vld [vmem:[#allocation7 + $0x200] sm:$0xf] }
  0x3f   :  { %973 = vmatpush.bf16.msrb.mxu1 %v1886_v53  ;;  %v1982_v53 = vor.u32 %v2286_v45, %v1981_v44  ;;  %v1909_v54 = vld [vmem:[#allocation7 + $0x310] sm:$0xf]  ;;  %v2268_v55 = vld [vmem:[#allocation7 + $0x314] sm:$0xf0]  ;;  %v2234_v59 = vld [vmem:[#allocation7 + $0x204] sm:$0xf0]  ;;  %v1846_v61 = vor.u32 %v2252_v52, %v1845_v51 }
  0x40   :  { %986 = vmatpush.bf16.msrb.mxu2 %v1950_v56  ;;  %v1973_v56 = vld [vmem:[#allocation7 + $0x390] sm:$0xf]  ;;  %v2284_v57 = vld [vmem:[#allocation7 + $0x394] sm:$0xf0]  ;;  %v1837_v62 = vld [vmem:[#allocation7 + $0x280] sm:$0xf]  ;;  %v1910_v1 = vor.u32 %v2268_v55, %v1909_v54 }
  0x41   :  { %999 = vmatpush.bf16.msrb.mxu3 %v2014_v60  ;;  %v1782_v60 = vor.u32 %v2236_v50, %v1781_v48  ;;  %v2250_v63 = vld [vmem:[#allocation7 + $0x284] sm:$0xf0]  ;;  %v110_v4 = vld [vmem:[#allocation2 + $0x18] sm:$0xff]  ;;  %v1974_v5 = vor.u32 %v2284_v57, %v1973_v56  ;;  %v1703_v13 = vld [vmem:[#allocation7 + $0x178] sm:$0xf0]  ;;  %vm1471_vm2 = vcmask 1040384  }
  0x42   :  { %961 = vmatpush.bf16.msrb.mxu0 %v1814_v2  ;;  %v109_v0 = vld [vmem:[#allocation2 + $0x10] sm:$0xff]  ;;  %v1901_v2 = vld [vmem:[#allocation7 + $0x300] sm:$0xf]  ;;  %v2183_v6 = vld [vmem:[#allocation7 + $0x74] sm:$0xf]  ;;  %v1838_v18 = vor.u32 %v2250_v63, %v1837_v62  ;;  %v249_v21 = vunpack.c.l.b16 %v110_v4  ;;  %s2509_s11 = smov [#allocation11]  }
  0x43   :  { %974 = vmatpush.bf16.msrb.mxu1 %v1878_v7  ;;  %v2266_v3 = vld [vmem:[#allocation7 + $0x304] sm:$0xf0]  ;;  %v1575_v7 = vld [vmem:[#allocation7 + $0x78] sm:$0xf0]  ;;  %v2199_v8 = vld [vmem:[#allocation7 + $0xf4] sm:$0xf]  ;;  %v247_v14 = vunpack.c.l.b16 %v109_v0  ;;  %v248_v26 = vunpack.c.h.b16 %v109_v0 }
  0x44   :  { %987 = vmatpush.bf16.msrb.mxu2 %v1942_v11  ;;  %v1639_v11 = vld [vmem:[#allocation7 + $0xf8] sm:$0xf0]  ;;  %v2215_v12 = vld [vmem:[#allocation7 + $0x174] sm:$0xf]  ;;  %v1965_v19 = vld [vmem:[#allocation7 + $0x380] sm:$0xf]  ;;  %v2584_v39 = vpack.c.b16 %v249_v21, %v249_v21 }
  0x45   :  { %1000 = vmatpush.bf16.msrb.mxu3 %v2006_v17  ;;  %v1774_v17 = vor.u32 %v2234_v59, %v1773_v58  ;;  %v2282_v20 = vld [vmem:[#allocation7 + $0x384] sm:$0xf0]  ;;  %v2231_v24 = vld [vmem:[#allocation7 + $0x1f4] sm:$0xf]  ;;  %v1642_v27 = vor.u32 %v2199_v8, %v1639_v11  ;;  %v1706_v28 = vor.u32 %v2215_v12, %v1703_v13  ;;  %v1567_v30 = vld [vmem:[#allocation7 + $0x68] sm:$0xf0]  ;;  %v2582_v36 = vpack.c.b16 %v247_v14, %v247_v14 }
  0x46   :  { %962 = vmatpush.bf16.msrb.mxu0 %v1806_v22  ;;  %v1902_v22 = vor.u32 %v2266_v3, %v1901_v2  ;;  %v2197_v31 = vld [vmem:[#allocation7 + $0xe4] sm:$0xf]  ;;  %v1966_v32 = vor.u32 %v2282_v20, %v1965_v19  ;;  %v1631_v33 = vld [vmem:[#allocation7 + $0xe8] sm:$0xf0]  ;;  %v2586_v43 = vpack.c.b16 %v248_v26, %v248_v26  ;;  %v2195_v48 = vld [vmem:[#allocation7 + $0xd4] sm:$0xf] }
  0x47   :  { %975 = vmatpush.bf16.msrb.mxu1 %v1870_v23  ;;  %v1578_v23 = vor.u32 %v2183_v6, %v1575_v7  ;;  %v1759_v42 = vld [vmem:[#allocation7 + $0x1e8] sm:$0xf0]  ;;  %v1634_v44 = vor.u32 %v2197_v31, %v1631_v33  ;;  %v1623_v50 = vld [vmem:[#allocation7 + $0xd8] sm:$0xf0]  ;;  %v2211_v51 = vld [vmem:[#allocation7 + $0x154] sm:$0xf] }
  0x48   :  { %988 = vmatpush.bf16.msrb.mxu2 %v1934_v25  ;;  %v1767_v25 = vld [vmem:[#allocation7 + $0x1f8] sm:$0xf0]  ;;  %v2227_v55 = vld [vmem:[#allocation7 + $0x1d4] sm:$0xf]  ;;  %v1626_v57 = vor.u32 %v2195_v48, %v1623_v50  ;;  %v2177_v59 = vld [vmem:[#allocation7 + $0x44] sm:$0xf] }
  0x49   :  { %1001 = vmatpush.bf16.msrb.mxu3 %v1998_v29  ;;  %v2181_v29 = vld [vmem:[#allocation7 + $0x64] sm:$0xf]  ;;  %v1770_v38 = vor.u32 %v2231_v24, %v1767_v25  ;;  %v1687_v52 = vld [vmem:[#allocation7 + $0x158] sm:$0xf0]  ;;  %v1615_v62 = vld [vmem:[#allocation7 + $0xc8] sm:$0xf0] }
  0x4a   :  { %963 = vmatpush.bf16.msrb.mxu0 %v1798_v34  ;;  %v2213_v34 = vld [vmem:[#allocation7 + $0x164] sm:$0xf]  ;;  %v1570_v40 = vor.u32 %v2181_v29, %v1567_v30  ;;  %v1751_v56 = vld [vmem:[#allocation7 + $0x1d8] sm:$0xf0]  ;;  %v1690_v58 = vor.u32 %v2211_v51, %v1687_v52  ;;  %v1679_v0 = vld [vmem:[#allocation7 + $0x148] sm:$0xf0] }
  0x4b   :  { %976 = vmatpush.bf16.msrb.mxu1 %v1862_v35  ;;  %v1695_v35 = vld [vmem:[#allocation7 + $0x168] sm:$0xf0]  ;;  %v2209_v63 = vld [vmem:[#allocation7 + $0x144] sm:$0xf]  ;;  %v2175_v7 = vld [vmem:[#allocation7 + $0x34] sm:$0xf] }
  0x4c   :  { %989 = vmatpush.bf16.msrb.mxu2 %v1926_v37  ;;  %v250_v37 = vunpack.c.h.b16 %v110_v4  ;;  %v1698_v45 = vor.u32 %v2213_v34, %v1695_v35  ;;  %v2225_v3 = vld [vmem:[#allocation7 + $0x1c4] sm:$0xf]  ;;  %v1743_v4 = vld [vmem:[#allocation7 + $0x1c8] sm:$0xf0]  ;;  %v1682_v6 = vor.u32 %v2209_v63, %v1679_v0  ;;  %v1543_v8 = vld [vmem:[#allocation7 + $0x38] sm:$0xf0] }
  0x4d   :  { %1002 = vmatpush.bf16.msrb.mxu3 %v1990_v41  ;;  %v2229_v41 = vld [vmem:[#allocation7 + $0x1e4] sm:$0xf]  ;;  %v2191_v11 = vld [vmem:[#allocation7 + $0xb4] sm:$0xf]  ;;  %v1607_v12 = vld [vmem:[#allocation7 + $0xb8] sm:$0xf0] }
  0x4e   :  { %964 = vmatpush.bf16.msrb.mxu0 %v1790_v46  ;;  %v2179_v46 = vld [vmem:[#allocation7 + $0x54] sm:$0xf]  ;;  %v1671_v14 = vld [vmem:[#allocation7 + $0x138] sm:$0xf0]  ;;  %v1610_v21 = vor.u32 %v2191_v11, %v1607_v12  ;;  %v1535_v24 = vld [vmem:[#allocation7 + $0x28] sm:$0xf0] }
  0x4f   :  { %977 = vmatpush.bf16.msrb.mxu1 %v1854_v47  ;;  %v1559_v47 = vld [vmem:[#allocation7 + $0x58] sm:$0xf0]  ;;  %v2207_v13 = vld [vmem:[#allocation7 + $0x134] sm:$0xf]  ;;  %v2189_v25 = vld [vmem:[#allocation7 + $0xa4] sm:$0xf] }
  0x50   :  { %990 = vmatpush.bf16.msrb.mxu2 %v1918_v49  ;;  %v2589_v49 = vpack.c.b16 %v250_v37, %v250_v37  ;;  %v1562_v54 = vor.u32 %v2179_v46, %v1559_v47  ;;  %v2223_v19 = vld [vmem:[#allocation7 + $0x1b4] sm:$0xf]  ;;  %v1735_v20 = vld [vmem:[#allocation7 + $0x1b8] sm:$0xf0]  ;;  %v1599_v26 = vld [vmem:[#allocation7 + $0xa8] sm:$0xf0] }
  0x51   :  { %1003 = vmatpush.bf16.msrb.mxu3 %v1982_v53  ;;  %v1762_v53 = vor.u32 %v2229_v41, %v1759_v42  ;;  %v1738_v29 = vor.u32 %v2223_v19, %v1735_v20  ;;  %v2221_v31 = vld [vmem:[#allocation7 + $0x1a4] sm:$0xf]  ;;  %v1602_v33 = vor.u32 %v2189_v25, %v1599_v26  ;;  %v2171_v35 = vld [vmem:[#allocation7 + $0x14] sm:$0xf]  ;;  %v1527_v37 = vld [vmem:[#allocation7 + $0x18] sm:$0xf0] }
  0x52   :  { %965 = vmatpush.bf16.msrb.mxu0 %v1782_v60  ;;  %v1551_v60 = vld [vmem:[#allocation7 + $0x48] sm:$0xf0]  ;;  %v2203_v41 = vld [vmem:[#allocation7 + $0x114] sm:$0xf]  ;;  %v1655_v42 = vld [vmem:[#allocation7 + $0x118] sm:$0xf0]  ;;  %v1530_v46 = vor.u32 %v2171_v35, %v1527_v37 }
  0x53   :  { %978 = vmatpush.bf16.msrb.mxu1 %v1846_v61  ;;  %v2193_v61 = vld [vmem:[#allocation7 + $0xc4] sm:$0xf]  ;;  %v1554_v2 = vor.u32 %v2177_v59, %v1551_v60  ;;  %v1719_v47 = vld [vmem:[#allocation7 + $0x198] sm:$0xf0]  ;;  %v1519_v50 = vld [vmem:[#allocation7 + $0x8] sm:$0xf0]  ;;  %v1658_v52 = vor.u32 %v2203_v41, %v1655_v42 }
  0x54   :  { %991 = vmatpush.bf16.msrb.mxu2 %v1910_v1  ;;  %v1754_v1 = vor.u32 %v2227_v55, %v1751_v56  ;;  %v2169_v48 = vld [vmem:[#allocation7 + $0x4] sm:$0xf]  ;;  %v1647_v56 = vld [vmem:[#allocation7 + $0x108] sm:$0xf0]  ;;  %v2263_v60 = vld [vmem:[#allocation7 + $0x2f4] sm:$0xf] }
  0x55   :  { %1004 = vmatpush.bf16.msrb.mxu3 %v1974_v5  ;;  %v1618_v5 = vor.u32 %v2193_v61, %v1615_v62  ;;  %v2201_v55 = vld [vmem:[#allocation7 + $0x104] sm:$0xf]  ;;  %v1895_v61 = vld [vmem:[#allocation7 + $0x2f8] sm:$0xf0]  ;;  %v2279_v62 = vld [vmem:[#allocation7 + $0x374] sm:$0xf]  ;;  %v1522_v63 = vor.u32 %v2169_v48, %v1519_v50 }
  0x56   :  { %966 = vmatpush.bf16.msrb.mxu0 %v1774_v17  ;;  %v1746_v17 = vor.u32 %v2225_v3, %v1743_v4  ;;  %v1959_v0 = vld [vmem:[#allocation7 + $0x378] sm:$0xf0]  ;;  %v1650_v4 = vor.u32 %v2201_v55, %v1647_v56  ;;  %v2245_v11 = vld [vmem:[#allocation7 + $0x264] sm:$0xf]  ;;  %v2243_v26 = vld [vmem:[#allocation7 + $0x254] sm:$0xf] }
  0x57   :  { %979 = vmatpush.bf16.msrb.mxu1 %v1838_v18  ;;  %v1546_v18 = vor.u32 %v2175_v7, %v1543_v8  ;;  %v1898_v8 = vor.u32 %v2263_v60, %v1895_v61  ;;  %v1962_v12 = vor.u32 %v2279_v62, %v1959_v0  ;;  %v2277_v20 = vld [vmem:[#allocation7 + $0x364] sm:$0xf]  ;;  %v2007_v35 = vld [vmem:[#allocation7 + $0x3d8] sm:$0xf0]  ;;  %v1807_v42 = vld [vmem:[#allocation7 + $0x248] sm:$0xf0] }
  0x58   :  { %992 = vmatpush.bf16.msrb.mxu2 %v1902_v22  ;;  %v1674_v22 = vor.u32 %v2207_v13, %v1671_v14  ;;  %v1823_v14 = vld [vmem:[#allocation7 + $0x268] sm:$0xf0]  ;;  %v1863_v55 = vld [vmem:[#allocation7 + $0x2b8] sm:$0xf0]  ;;  %v2237_v62 = vld [vmem:[#allocation7 + $0x224] sm:$0xf] }
  0x59   :  { %1005 = vmatpush.bf16.msrb.mxu3 %v1966_v32  ;;  %967 = vmatmul.bf16.vlgmr.msrb.gmra.mxu0 %v2582_v36  ;;  %v1727_v32 = vld [vmem:[#allocation7 + $0x1a8] sm:$0xf0]  ;;  %s1501_s12 = sshll.u32 %s2509_s11, 4  ;;  %s1503_s15 = sshll.u32 %s2638_s8, 4  ;;  %vm1494_vm4 = vcmask 0   ;;  %s1502_s12 = int_to_ptr.vmem [resolvable:$true] %s1501_s12  ;;  %s1504_s15 = int_to_ptr.hbm [resolvable:$true] %s1503_s15 }
  0x5a   :  { %1011 = vmatpush.bf16.msra.mxu0 %v1578_v23  ;;  %980 = vmatmul.bf16.vlgmr.msrb.gmra.mxu1 %v2586_v43  ;;  %v2173_v23 = vld [vmem:[#allocation7 + $0x24] sm:$0xf]  ;;  %v1999_v48 = vld [vmem:[#allocation7 + $0x3c8] sm:$0xf0] }
  0x5b   :  { %1024 = vmatpush.bf16.msra.mxu1 %v1642_v27  ;;  %993 = vmatmul.bf16.vlgmr.msrb.gmra.mxu2 %v2584_v39  ;;  %v2205_v27 = vld [vmem:[#allocation7 + $0x124] sm:$0xf]  ;;  %v1538_v30 = vor.u32 %v2173_v23, %v1535_v24  ;;  %v2015_v23 = vld [vmem:[#allocation7 + $0x3e8] sm:$0xf0]  ;;  %v1826_v24 = vor.u32 %v2245_v11, %v1823_v14  ;;  %v1783_v14 = vld [vmem:[#allocation7 + $0x218] sm:$0xf0] }
  0x5c   :  { %1037 = vmatpush.bf16.msra.mxu2 %v1706_v28  ;;  %1006 = vmatmul.bf16.vlgmr.msrb.gmra.mxu3 %v2589_v49  ;;  %v1663_v28 = vld [vmem:[#allocation7 + $0x128] sm:$0xf0] }
  0x5d   :  { %1050 = vmatpush.bf16.msra.mxu3 %v1770_v38  ;;  %v1666_v34 = vor.u32 %v2205_v27, %v1663_v28  ;;  %v2187_v38 = vld [vmem:[#allocation7 + $0x94] sm:$0xf]  ;;  %v1815_v28 = vld [vmem:[#allocation7 + $0x258] sm:$0xf0]  ;;  %v1791_v0 = vld [vmem:[#allocation7 + $0x228] sm:$0xf0] }
  0x5e   :  { %1012 = vmatpush.bf16.msra.mxu0 %v1570_v40  ;;  %v1591_v40 = vld [vmem:[#allocation7 + $0x98] sm:$0xf0]  ;;  %v1818_v37 = vor.u32 %v2243_v26, %v1815_v28  ;;  %v2233_v28 = vld [vmem:[#allocation7 + $0x204] sm:$0xf] }
  0x5f   :  { %1025 = vmatpush.bf16.msra.mxu1 %v1634_v44  ;;  %v1730_v44 = vor.u32 %v2221_v31, %v1727_v32  ;;  %v1594_v51 = vor.u32 %v2187_v38, %v1591_v40  ;;  %v2275_v32 = vld [vmem:[#allocation7 + $0x354] sm:$0xf]  ;;  %v2241_v40 = vld [vmem:[#allocation7 + $0x244] sm:$0xf] }
  0x60   :  { %1038 = vmatpush.bf16.msra.mxu2 %v1698_v45  ;;  %v2219_v45 = vld [vmem:[#allocation7 + $0x194] sm:$0xf] }
  0x61   :  { %1051 = vmatpush.bf16.msra.mxu3 %v1762_v53  ;;  %v2185_v53 = vld [vmem:[#allocation7 + $0x84] sm:$0xf]  ;;  %v1722_v59 = vor.u32 %v2219_v45, %v1719_v47  ;;  %v1871_v45 = vld [vmem:[#allocation7 + $0x2c8] sm:$0xf0] }
  0x62   :  { %1013 = vmatpush.bf16.msra.mxu0 %v1562_v54  ;;  %v1583_v54 = vld [vmem:[#allocation7 + $0x88] sm:$0xf0]  ;;  %v2289_v47 = vld [vmem:[#allocation7 + $0x3c4] sm:$0xf] }
  0x63   :  { %1026 = vmatpush.bf16.msra.mxu1 %v1626_v57  ;;  %v2247_v57 = vld [vmem:[#allocation7 + $0x274] sm:$0xf]  ;;  %v1586_v3 = vor.u32 %v2185_v53, %v1583_v54  ;;  %v1799_v53 = vld [vmem:[#allocation7 + $0x238] sm:$0xf0]  ;;  %v2002_v56 = vor.u32 %v2289_v47, %v1999_v48 }
  0x64   :  { %1039 = vmatpush.bf16.msra.mxu2 %v1690_v58  ;;  %v1831_v58 = vld [vmem:[#allocation7 + $0x278] sm:$0xf0]  ;;  %v2255_v54 = vld [vmem:[#allocation7 + $0x2b4] sm:$0xf] }
  0x65   :  { %1052 = vmatpush.bf16.msra.mxu3 %v1754_v1  ;;  %v2217_v1 = vld [vmem:[#allocation7 + $0x184] sm:$0xf]  ;;  %v1834_v7 = vor.u32 %v2247_v57, %v1831_v58  ;;  %v2271_v57 = vld [vmem:[#allocation7 + $0x334] sm:$0xf]  ;;  %v1866_v61 = vor.u32 %v2255_v54, %v1863_v55 }
  0x66   :  { %1014 = vmatpush.bf16.msra.mxu0 %v1554_v2  ;;  %v1711_v2 = vld [vmem:[#allocation7 + $0x188] sm:$0xf0]  ;;  %v2287_v58 = vld [vmem:[#allocation7 + $0x3b4] sm:$0xf] }
  0x67   :  { %1027 = vmatpush.bf16.msra.mxu1 %v1618_v5  ;;  %v2295_v5 = vld [vmem:[#allocation7 + $0x3f4] sm:$0xf]  ;;  %v1714_v13 = vor.u32 %v2217_v1, %v1711_v2  ;;  %v2253_v1 = vld [vmem:[#allocation7 + $0x2a4] sm:$0xf]  ;;  %v1855_v2 = vld [vmem:[#allocation7 + $0x2a8] sm:$0xf0] }
  0x68   :  { %1040 = vmatpush.bf16.msra.mxu2 %v1682_v6  ;;  %v2023_v6 = vld [vmem:[#allocation7 + $0x3f8] sm:$0xf0]  ;;  %v1858_v11 = vor.u32 %v2253_v1, %v1855_v2 }
  0x69   :  { %1053 = vmatpush.bf16.msra.mxu3 %v1746_v17  ;;  %v2261_v17 = vld [vmem:[#allocation7 + $0x2e4] sm:$0xf]  ;;  %v2026_v19 = vor.u32 %v2295_v5, %v2023_v6  ;;  %v1919_v5 = vld [vmem:[#allocation7 + $0x328] sm:$0xf0] }
  0x6a   :  { %1015 = vmatpush.bf16.msra.mxu0 %v1546_v18  ;;  %v1887_v18 = vld [vmem:[#allocation7 + $0x2e8] sm:$0xf0]  ;;  %v2285_v6 = vld [vmem:[#allocation7 + $0x3a4] sm:$0xf] }
  0x6b   :  { %1028 = vmatpush.bf16.msra.mxu1 %v1610_v21  ;;  %v1951_v21 = vld [vmem:[#allocation7 + $0x368] sm:$0xf0]  ;;  %v1890_v25 = vor.u32 %v2261_v17, %v1887_v18  ;;  %v2251_v17 = vld [vmem:[#allocation7 + $0x294] sm:$0xf]  ;;  %v1847_v18 = vld [vmem:[#allocation7 + $0x298] sm:$0xf0] }
  0x6c   :  { %1041 = vmatpush.bf16.msra.mxu2 %v1674_v22  ;;  %v2293_v22 = vld [vmem:[#allocation7 + $0x3e4] sm:$0xf]  ;;  %v1954_v27 = vor.u32 %v2277_v20, %v1951_v21  ;;  %v2267_v20 = vld [vmem:[#allocation7 + $0x314] sm:$0xf]  ;;  %v1911_v21 = vld [vmem:[#allocation7 + $0x318] sm:$0xf0] }
  0x6d   :  { %1054 = vmatpush.bf16.msra.mxu3 %v1738_v29  ;;  %v2259_v29 = vld [vmem:[#allocation7 + $0x2d4] sm:$0xf]  ;;  %v2018_v31 = vor.u32 %v2293_v22, %v2015_v23  ;;  %v1975_v23 = vld [vmem:[#allocation7 + $0x398] sm:$0xf0] }
  0x6e   :  { %1016 = vmatpush.bf16.msra.mxu0 %v1538_v30  ;;  %v1879_v30 = vld [vmem:[#allocation7 + $0x2d8] sm:$0xf0]  ;;  %v2283_v22 = vld [vmem:[#allocation7 + $0x394] sm:$0xf] }
  0x6f   :  { %1029 = vmatpush.bf16.msra.mxu1 %v1602_v33  ;;  %v1943_v33 = vld [vmem:[#allocation7 + $0x358] sm:$0xf0]  ;;  %v1882_v38 = vor.u32 %v2259_v29, %v1879_v30  ;;  %v2298_v29 = vld [vmem:[#allocation8 + $0x4] sm:$0xf]  ;;  %v2035_v30 = vld [vmem:[#allocation8 + $0x8] sm:$0x10] }
  0x70   :  { %1042 = vmatpush.bf16.msra.mxu2 %v1666_v34  ;;  %v2291_v34 = vld [vmem:[#allocation7 + $0x3d4] sm:$0xf]  ;;  %v1946_v41 = vor.u32 %v2275_v32, %v1943_v33  ;;  %v1775_v32 = vld [vmem:[#allocation7 + $0x208] sm:$0xf0]  ;;  %v2249_v33 = vld [vmem:[#allocation7 + $0x284] sm:$0xf] }
  0x71   :  { %1055 = vmatpush.bf16.msra.mxu3 %v1730_v44  ;;  %v2257_v44 = vld [vmem:[#allocation7 + $0x2c4] sm:$0xf] }
  0x72   :  { %1017 = vmatpush.bf16.msra.mxu0 %v1530_v46  ;;  %v2273_v46 = vld [vmem:[#allocation7 + $0x344] sm:$0xf]  ;;  %v1874_v50 = vor.u32 %v2257_v44, %v1871_v45  ;;  %v2038_v44 = vor.u32 %v2298_v29, %v2035_v30  ;;  %v1778_v45 = vor.u32 %v2233_v28, %v1775_v32  ;;  %v2093_v28 = vld [vmem:[#allocation10 + $0x68] sm:$0xf0] }
  0x73   :  { %1030 = vmatpush.bf16.msra.mxu1 %v1594_v51  ;;  %v2239_v51 = vld [vmem:[#allocation7 + $0x234] sm:$0xf]  ;;  %v2157_v32 = vld [vmem:[#allocation10 + $0xe8] sm:$0xf0] }
  0x74   :  { %1043 = vmatpush.bf16.msra.mxu2 %v1658_v52  ;;  %v1802_v60 = vor.u32 %v2239_v51, %v1799_v53  ;;  %v1141_v48 = vsel %vm1136_vm0, %v2038_v44, 0 }
  0x75   :  { %1056 = vmatpush.bf16.msra.mxu3 %v1722_v59  ;;  %v1991_v59 = vld [vmem:[#allocation7 + $0x3b8] sm:$0xf0] }
  0x76   :  { %1018 = vmatpush.bf16.msra.mxu0 %v1522_v63 }
  0x77   :  { %1031 = vmatpush.bf16.msra.mxu1 %v1586_v3  ;;  %v1994_v3 = vor.u32 %v2287_v58, %v1991_v59 }
  0x78   :  { %1044 = vmatpush.bf16.msra.mxu2 %v1650_v4  ;;  %v2269_v4 = vld [vmem:[#allocation7 + $0x324] sm:$0xf] }
  0x79   :  { %1057 = vmatpush.bf16.msra.mxu3 %v1714_v13  ;;  %1019 = vmatmul.bf16.vlgmr.msra.gmra.mxu0 %v2574_v15  ;;  %v2010_v15 = vor.u32 %v2291_v34, %v2007_v35  ;;  %v1922_v13 = vor.u32 %v2269_v4, %v1919_v5  ;;  %v1839_v34 = vld [vmem:[#allocation7 + $0x288] sm:$0xf0]  ;;  %v1978_v35 = vor.u32 %v2283_v22, %v1975_v23  ;;  %v2099_v4 = vld [vmem:[#allocation10 + $0x70] sm:$0xf]  ;;  %v2315_v5 = vld [vmem:[#allocation10 + $0x74] sm:$0xf0] }
  0x7a   :  { %1063 = vmatpush.bf16.msrb.mxu0 %v1834_v7  ;;  %1032 = vmatmul.bf16.vlgmr.msra.gmra.mxu1 %v2576_v16  ;;  %v1935_v16 = vld [vmem:[#allocation7 + $0x348] sm:$0xf0]  ;;  %v2091_v22 = vld [vmem:[#allocation10 + $0x60] sm:$0xf]  ;;  %v2313_v23 = vld [vmem:[#allocation10 + $0x64] sm:$0xf0] }
  0x7b   :  { %1076 = vmatpush.bf16.msrb.mxu1 %v1898_v8  ;;  %1045 = vmatmul.bf16.vlgmr.msra.gmra.mxu2 %v2570_v9  ;;  %v1810_v9 = vor.u32 %v2241_v40, %v1807_v42  ;;  %v1938_v52 = vor.u32 %v2273_v46, %v1935_v16  ;;  %v1983_v7 = vld [vmem:[#allocation7 + $0x3a8] sm:$0xf0]  ;;  %v1794_v8 = vor.u32 %v2237_v62, %v1791_v0 }
  0x7c   :  { %1089 = vmatpush.bf16.msrb.mxu2 %v1962_v12  ;;  %1058 = vmatmul.bf16.vlgmr.msra.gmra.mxu3 %v2572_v10  ;;  %v1927_v10 = vld [vmem:[#allocation7 + $0x338] sm:$0xf0]  ;;  %v2235_v12 = vld [vmem:[#allocation7 + $0x214] sm:$0xf]  ;;  %v1967_v42 = vld [vmem:[#allocation7 + $0x388] sm:$0xf0] }
  0x7d   :  { %1102 = vmatpush.bf16.msrb.mxu3 %v2026_v19  ;;  %v1930_v63 = vor.u32 %v2271_v57, %v1927_v10  ;;  %v1986_v19 = vor.u32 %v2285_v6, %v1983_v7  ;;  %v1786_v26 = vor.u32 %v2235_v12, %v1783_v14  ;;  %v2163_v6 = vld [vmem:[#allocation10 + $0xf0] sm:$0xf]  ;;  %v2100_v7 = vor.u32 %v2315_v5, %v2099_v4  ;;  %v2101_v12 = vld [vmem:[#allocation10 + $0x78] sm:$0xf0]  ;;  %v2322_v4 = vld [vmem:[#allocation10 + $0xb4] sm:$0xf] }
  0x7e   :  { %1064 = vmatpush.bf16.msrb.mxu0 %v1826_v24  ;;  %v2033_v24 = vld [vmem:[#allocation8] sm:$0xf] }
  0x7f   :  { %1077 = vmatpush.bf16.msrb.mxu1 %v1890_v25  ;;  %v2299_v25 = vld [vmem:[#allocation8 + $0x4] sm:$0x10] }
  0x80   :  { %1090 = vmatpush.bf16.msrb.mxu2 %v1954_v27  ;;  %v1850_v27 = vor.u32 %v2251_v17, %v1847_v18  ;;  %v2034_v40 = vor.u32 %v2299_v25, %v2033_v24  ;;  %v2330_v17 = vld [vmem:[#allocation10 + $0xf4] sm:$0xf]  ;;  %v2165_v18 = vld [vmem:[#allocation10 + $0xf8] sm:$0xf0]  ;;  %v2155_v24 = vld [vmem:[#allocation10 + $0xe0] sm:$0xf]  ;;  %v2092_v25 = vor.u32 %v2313_v23, %v2091_v22 }
  0x81   :  { %1103 = vmatpush.bf16.msrb.mxu3 %v2018_v31  ;;  %v1914_v31 = vor.u32 %v2267_v20, %v1911_v21  ;;  %v2168_v20 = vor.u32 %v2330_v17, %v2165_v18  ;;  %v2321_v17 = vld [vmem:[#allocation10 + $0xa4] sm:$0xf0]  ;;  %v2304_v18 = vld [vmem:[#allocation10 + $0x24] sm:$0xf] }
  0x82   :  { %1065 = vmatpush.bf16.msrb.mxu0 %v1818_v37  ;;  %v2265_v37 = vld [vmem:[#allocation7 + $0x304] sm:$0xf]  ;;  %v1138_v47 = vsel %vm1136_vm0, %v2034_v40, 0  ;;  %v2327_v40 = vld [vmem:[#allocation10 + $0xd4] sm:$0xf0] }
  0x83   :  { %1078 = vmatpush.bf16.msrb.mxu1 %v1882_v38  ;;  %v1903_v38 = vld [vmem:[#allocation7 + $0x308] sm:$0xf0] }
  0x84   :  { %1091 = vmatpush.bf16.msrb.mxu2 %v1946_v41  ;;  %v2281_v41 = vld [vmem:[#allocation7 + $0x384] sm:$0xf]  ;;  %v1906_v46 = vor.u32 %v2265_v37, %v1903_v38  ;;  %v2147_v37 = vld [vmem:[#allocation10 + $0xd0] sm:$0xf] }
  0x85   :  { %1104 = vmatpush.bf16.msrb.mxu3 %v2010_v15  ;;  %v1842_v15 = vor.u32 %v2249_v33, %v1839_v34  ;;  %v1970_v16 = vor.u32 %v2281_v41, %v1967_v42  ;;  %v2083_v34 = vld [vmem:[#allocation10 + $0x50] sm:$0xf]  ;;  %v2310_v41 = vld [vmem:[#allocation10 + $0x54] sm:$0xf]  ;;  %v2085_v42 = vld [vmem:[#allocation10 + $0x58] sm:$0xf0] }
  0x86   :  { %1066 = vmatpush.bf16.msrb.mxu0 %v1810_v9  ;;  %v2297_v9 = vld [vmem:[#allocation5] sm:$0xff] }
  0x87   :  { %1079 = vmatpush.bf16.msrb.mxu1 %v1874_v50 }
  0x88   :  { %1092 = vmatpush.bf16.msrb.mxu2 %v1938_v52 }
  0x89   :  { %1105 = vmatpush.bf16.msrb.mxu3 %v2002_v56 }
  0x8a   :  { %1067 = vmatpush.bf16.msrb.mxu0 %v1802_v60 }
  0x8b   :  { %1080 = vmatpush.bf16.msrb.mxu1 %v1866_v61 }
  0x8c   :  { %1093 = vmatpush.bf16.msrb.mxu2 %v1930_v63 }
  0x8d   :  { %1106 = vmatpush.bf16.msrb.mxu3 %v1994_v3 }
  0x8e   :  { %1068 = vmatpush.bf16.msrb.mxu0 %v1794_v8  ;;  %v2331_v8 = vld [vmem:[#allocation10 + $0xf4] sm:$0xf0] }
  0x8f   :  { %1081 = vmatpush.bf16.msrb.mxu1 %v1858_v11  ;;  %v2314_v11 = vld [vmem:[#allocation10 + $0x74] sm:$0xf] }
  0x90   :  { %1094 = vmatpush.bf16.msrb.mxu2 %v1922_v13  ;;  %v2164_v13 = vor.u32 %v2331_v8, %v2163_v6  ;;  %v2104_v14 = vor.u32 %v2314_v11, %v2101_v12  ;;  %v2133_v6 = vld [vmem:[#allocation10 + $0xb8] sm:$0xf0]  ;;  %v2059_v11 = vld [vmem:[#allocation10 + $0x20] sm:$0xf]  ;;  %v2305_v12 = vld [vmem:[#allocation10 + $0x24] sm:$0xf0] }
  0x91   :  { %1107 = vmatpush.bf16.msrb.mxu3 %v1986_v19  ;;  %v2136_v8 = vor.u32 %v2322_v4, %v2133_v6 }
  0x92   :  { %1069 = vmatpush.bf16.msrb.mxu0 %v1786_v26  ;;  %v2329_v26 = vld [vmem:[#allocation10 + $0xe4] sm:$0xf0] }
  0x93   :  { %1082 = vmatpush.bf16.msrb.mxu1 %v1850_v27  ;;  %v2312_v27 = vld [vmem:[#allocation10 + $0x64] sm:$0xf]  ;;  %v2156_v29 = vor.u32 %v2329_v26, %v2155_v24 }
  0x94   :  { %1095 = vmatpush.bf16.msrb.mxu2 %v1914_v31  ;;  %v2096_v30 = vor.u32 %v2312_v27, %v2093_v28  ;;  %v2328_v31 = vld [vmem:[#allocation10 + $0xe4] sm:$0xf]  ;;  %v2051_v27 = vld [vmem:[#allocation10 + $0x10] sm:$0xf]  ;;  %v2303_v28 = vld [vmem:[#allocation10 + $0x14] sm:$0xf0] }
  0x95   :  { %1108 = vmatpush.bf16.msrb.mxu3 %v1978_v35  ;;  %v2160_v33 = vor.u32 %v2328_v31, %v2157_v32  ;;  %v2311_v35 = vld [vmem:[#allocation10 + $0x54] sm:$0xf0]  ;;  %v2320_v24 = vld [vmem:[#allocation10 + $0xa4] sm:$0xf]  ;;  %v2302_v32 = vld [vmem:[#allocation10 + $0x14] sm:$0xf] }
  0x96   :  { %1070 = vmatpush.bf16.msrb.mxu0 %v1778_v45  ;;  %v2084_v38 = vor.u32 %v2311_v35, %v2083_v34  ;;  %v2148_v45 = vor.u32 %v2327_v40, %v2147_v37  ;;  %v2319_v31 = vld [vmem:[#allocation10 + $0x94] sm:$0xf0]  ;;  %v2318_v37 = vld [vmem:[#allocation10 + $0x94] sm:$0xf] }
  0x97   :  { %1083 = vmatpush.bf16.msrb.mxu1 %v1842_v15  ;;  %v2088_v15 = vor.u32 %v2310_v41, %v2085_v42  ;;  %v2043_v41 = vld [vmem:[#allocation10] sm:$0xf]  ;;  %v2301_v42 = vld [vmem:[#allocation10 + $0x4] sm:$0xf0] }
  0x98   :  { %1096 = vmatpush.bf16.msrb.mxu2 %v1906_v46  ;;  %v2326_v46 = vld [vmem:[#allocation10 + $0xd4] sm:$0xf] }
  0x99   :  { %1109 = vmatpush.bf16.msrb.mxu3 %v1970_v16  ;;  %1071 = vmatmul.bf16.vlgmr.msrb.gmra.mxu0 %v2582_v36  ;;  %v2149_v16 = vld [vmem:[#allocation10 + $0xd8] sm:$0xf0] }
  0x9a   :  { %1150 = vmatpush.bf16.msra.mxu0 %v1138_v47  ;;  %1084 = vmatmul.bf16.vlgmr.msrb.gmra.mxu1 %v2586_v43  ;;  %v2075_v47 = vld [vmem:[#allocation10 + $0x40] sm:$0xf] }
  0x9b   :  { %1164 = vmatpush.bf16.msra.mxu1 %v1141_v48  ;;  %1097 = vmatmul.bf16.vlgmr.msrb.gmra.mxu2 %v2584_v39 }
  0x9c   :  { %1110 = vmatmul.bf16.vlgmr.msrb.gmra.mxu3 %v2589_v49  ;;  %1389 = vmatpush.bf16.msra.mxu2 %v2100_v7 }
  0x9d   :  { %1403 = vmatpush.bf16.msra.mxu3 %v2164_v13  ;;  %v2123_v13 = vld [vmem:[#allocation10 + $0xa0] sm:$0xf] }
  0x9e   :  { %1417 = vmatpush.bf16.msrb.mxu0 %v2104_v14  ;;  %v2060_v14 = vor.u32 %v2305_v12, %v2059_v11  ;;  %v2124_v22 = vor.u32 %v2321_v17, %v2123_v13 }
  0x9f   :  { %1431 = vmatpush.bf16.msrb.mxu1 %v2168_v20  ;;  %v2061_v20 = vld [vmem:[#allocation10 + $0x28] sm:$0xf0] }
  0xa0   :  { %1390 = vmatpush.bf16.msra.mxu2 %v2092_v25  ;;  %v2064_v23 = vor.u32 %v2304_v18, %v2061_v20  ;;  %v2125_v25 = vld [vmem:[#allocation10 + $0xa8] sm:$0xf0] }
  0xa1   :  { %1404 = vmatpush.bf16.msra.mxu3 %v2156_v29  ;;  %v2128_v26 = vor.u32 %v2320_v24, %v2125_v25  ;;  %v2115_v29 = vld [vmem:[#allocation10 + $0x90] sm:$0xf]  ;;  %v1223_v24 = vld [vmem:[%s2636_s6] sm:$0x3] }
  0xa2   :  { %1418 = vmatpush.bf16.msrb.mxu0 %v2096_v30  ;;  %v2052_v30 = vor.u32 %v2303_v28, %v2051_v27  ;;  %v2116_v34 = vor.u32 %v2319_v31, %v2115_v29 }
  0xa3   :  { %1432 = vmatpush.bf16.msrb.mxu1 %v2160_v33  ;;  %v2053_v33 = vld [vmem:[#allocation10 + $0x18] sm:$0xf0] }
  0xa4   :  { %1391 = vmatpush.bf16.msra.mxu2 %v2084_v38  ;;  %v2056_v35 = vor.u32 %v2302_v32, %v2053_v33  ;;  %v2117_v38 = vld [vmem:[#allocation10 + $0x98] sm:$0xf0] }
  0xa5   :  { %1405 = vmatpush.bf16.msra.mxu3 %v2148_v45  ;;  %v2120_v40 = vor.u32 %v2318_v37, %v2117_v38  ;;  %v2107_v45 = vld [vmem:[#allocation10 + $0x80] sm:$0xf] }
  0xa6   :  { %1419 = vmatpush.bf16.msrb.mxu0 %v2088_v15  ;;  %v2044_v15 = vor.u32 %v2301_v42, %v2043_v41 }
  0xa9   :  { %2039 = vmatmul.msk.bf16.vlgmr.msra.gmra.mxu0 %vm1132_vm1, %v2297_v9 }
  0xaa   :  { %2040 = vmatmul.msk.bf16.vlgmr.msra.gmra.mxu1 %vm1132_vm1, %v2297_v9  ;;  %v2152_v9 = vor.u32 %v2326_v46, %v2149_v16  ;;  %v2317_v46 = vld [vmem:[#allocation10 + $0x84] sm:$0xf0]  ;;  %v2300_v16 = vld [vmem:[#allocation10 + $0x4] sm:$0xf] }
  0xac   :  { %1433 = vmatpush.bf16.msrb.mxu1 %v2152_v9 }
  0xb7   :  { %v929_v51 = vpop.f32.mrf.mxu1 }
  0xb9   :  { %v916_v50 = vpop.f32.mrf.mxu0 }
  0xba   :  { %v930_v52 = vadd.f32 %v929_v51, %v916_v50  ;;  %v2309_v50 = vld [vmem:[#allocation10 + $0x44] sm:$0xf0]  ;;  %v2139_v51 = vld [vmem:[#allocation10 + $0xc0] sm:$0xf] }
  0xbe   :  { %v942_v53 = vpop.f32.mrf.mxu2 }
  0xbf   :  { %v943_v54 = vadd.f32 %v942_v53, %v930_v52  ;;  %v931_v10 = vpop.f32.mrf.mxu1  ;;  %v2325_v52 = vld [vmem:[#allocation10 + $0xc4] sm:$0xf0] }
  0xc0   :  { %v2077_v10 = vld [vmem:[#allocation10 + $0x48] sm:$0xf0] }
  0xc1   :  { %v955_v55 = vpop.f32.mrf.mxu3  ;;  %v918_v57 = vpop.f32.mrf.mxu0 }
  0xc2   :  { %v956_v56 = vadd.f32 %v955_v55, %v943_v54  ;;  %v2076_v55 = vor.u32 %v2309_v50, %v2075_v47  ;;  %v2308_v57 = vld [vmem:[#allocation10 + $0x44] sm:$0xf]  ;;  %v2045_v47 = vld [vmem:[#allocation10 + $0x8] sm:$0xf0] }
  0xc3   :  { %v2048_v9 = vor.u32 %v2300_v16, %v2045_v47  ;;  %v2316_v50 = vld [vmem:[#allocation10 + $0x84] sm:$0xf] }
  0xc4   :  { %1392 = vmatpush.bf16.msra.mxu2 %v2076_v55 }
  0xc6   :  { %v944_v36 = vpop.f32.mrf.mxu2 }
  0xc7   :  { %v2324_v36 = vld [vmem:[#allocation10 + $0xc4] sm:$0xf] }
  0xc9   :  { %v957_v58 = vpop.f32.mrf.mxu3 }
  0xca   :  { %v2080_v58 = vor.u32 %v2308_v57, %v2077_v10 }
  0xcc   :  { %1420 = vmatpush.bf16.msrb.mxu0 %v2080_v58 }
  0xd6   :  { %v968_v43 = vpop.f32.mrf.mxu0 }
  0xd7   :  { %v969_v59 = vadd.f32 %v968_v43, %v956_v56  ;;  %v981_v39 = vpop.f32.mrf.mxu1  ;;  %v2140_v56 = vor.u32 %v2325_v52, %v2139_v51  ;;  %v2141_v43 = vld [vmem:[#allocation10 + $0xc8] sm:$0xf0] }
  0xd8   :  { %v2109_v51 = vld [vmem:[#allocation10 + $0x88] sm:$0xf0] }
  0xd9   :  { %v982_v60 = vadd.f32 %v981_v39, %v969_v59  ;;  %v2144_v59 = vor.u32 %v2324_v36, %v2141_v43  ;;  %1406 = vmatpush.bf16.msra.mxu3 %v2140_v56  ;;  %v2067_v39 = vld [vmem:[#allocation10 + $0x30] sm:$0xf] }
  0xdb   :  { %1434 = vmatpush.bf16.msrb.mxu1 %v2144_v59 }
  0xde   :  { %v994_v49 = vpop.f32.mrf.mxu2  ;;  %v970_v62 = vpop.f32.mrf.mxu0 }
  0xdf   :  { %v995_v61 = vadd.f32 %v994_v49, %v982_v60  ;;  %v1007_v63 = vpop.f32.mrf.mxu3  ;;  %v983_v0 = vpop.f32.mrf.mxu1  ;;  %v2307_v60 = vld [vmem:[#allocation10 + $0x34] sm:$0xf0]  ;;  %v2131_v49 = vld [vmem:[#allocation10 + $0xb0] sm:$0xf]  ;;  %1435 = vmatpush.bf16.msrb.mxu1 %v2136_v8 }
  0xe0   :  { %v2323_v62 = vld [vmem:[#allocation10 + $0xb4] sm:$0xf0] }
  0xe1   :  { %v2602_v1 = vadd.f32 %v1007_v63, %v995_v61  ;;  %v2068_v61 = vor.u32 %v2307_v60, %v2067_v39  ;;  %v2306_v63 = vld [vmem:[#allocation10 + $0x34] sm:$0xf] }
  0xe3   :  { %1393 = vmatpush.bf16.msra.mxu2 %v2068_v61  ;;  %1436 = vmatpush.bf16.msrb.mxu1 %v2128_v26 }
  0xe6   :  { %v996_v2 = vpop.f32.mrf.mxu2 }
  0xe7   :  { %v1009_v3 = vpop.f32.mrf.mxu3  ;;  %v2132_v2 = vor.u32 %v2323_v62, %v2131_v49  ;;  %1394 = vmatpush.bf16.msra.mxu2 %v2060_v14  ;;  %1437 = vmatpush.bf16.msrb.mxu1 %v2120_v40 }
  0xe8   :  { %v2069_v3 = vld [vmem:[#allocation10 + $0x38] sm:$0xf0] }
  0xe9   :  { %v2072_v5 = vor.u32 %v2306_v63, %v2069_v3  ;;  %1407 = vmatpush.bf16.msra.mxu3 %v2132_v2  ;;  %v1175_v63 = vld [vmem:[%s2634_s4] sm:$0x3] }
  0xea   :  { %v1177_v2 = vperm.slane %v1175_v63, 0  ;;  %v1178_v3 = vperm.slane %v1175_v63, 1 }
  0xeb   :  { %1421 = vmatpush.bf16.msrb.mxu0 %v2072_v5  ;;  %1395 = vmatpush.bf16.msra.mxu2 %v2052_v30  ;;  %v1225_v30 = vperm.slane %v1223_v24, 0 }
  0xed   :  { %1408 = vmatpush.bf16.msra.mxu3 %v2124_v22 }
  0xef   :  { %1422 = vmatpush.bf16.msrb.mxu0 %v2064_v23  ;;  %1396 = vmatpush.bf16.msra.mxu2 %v2044_v15 }
  0xf1   :  { %1409 = vmatpush.bf16.msra.mxu3 %v2116_v34 }
  0xf3   :  { %1423 = vmatpush.bf16.msrb.mxu0 %v2056_v35 }
  0xf6   :  { %v2604_v19 = vpop.f32.mrf.mxu0 }
  0xf7   :  { %v2606_v21 = vpop.f32.mrf.mxu1  ;;  %1424 = vmatpush.bf16.msrb.mxu0 %v2048_v9 }
  0xf8   :  { %v1034_v52 = vadd.f32 %v2606_v21, %v2604_v19 }
  0xfe   :  { %v2608_v44 = vpop.f32.mrf.mxu2  ;;  %v1022_v48 = vpop.f32.mrf.mxu0 }
  0xff   :  { %v1035_v53 = vpop.f32.mrf.mxu1  ;;  %v2610_v54 = vpop.f32.mrf.mxu3  ;;  %v2108_v48 = vor.u32 %v2317_v46, %v2107_v45  ;;  %v1047_v57 = vadd.f32 %v2608_v44, %v1034_v52 }
 0x100   :  { %v2112_v53 = vor.u32 %v2316_v50, %v2109_v51 }
 0x101   :  { %1410 = vmatpush.bf16.msra.mxu3 %v2108_v48  ;;  %v1060_v10 = vadd.f32 %v2610_v54, %v1047_v57 }
 0x102   :  { %1438 = vmatpush.bf16.msrb.mxu1 %v2112_v53 }
 0x106   :  { %v1048_v0 = vpop.f32.mrf.mxu2 }
 0x107   :  { %v1061_v7 = vpop.f32.mrf.mxu3 }
 0x116   :  { %v1072_v55 = vpop.f32.mrf.mxu0 }
 0x117   :  { %v1085_v56 = vpop.f32.mrf.mxu1  ;;  %v1073_v59 = vadd.f32 %v1072_v55, %v1060_v10  ;;  %v1463_v10 = vld [vmem:[%s2637_s7] sm:$0x3] }
 0x119   :  { %v1086_v60 = vadd.f32 %v1085_v56, %v1073_v59  ;;  %v1466_v59 = vperm.slane %v1463_v10, 1 }
 0x11e   :  { %v1098_v36 = vpop.f32.mrf.mxu2  ;;  %v1074_v58 = vpop.f32.mrf.mxu0 }
 0x11f   :  { %v1087_v43 = vpop.f32.mrf.mxu1  ;;  %v1111_v39 = vpop.f32.mrf.mxu3  ;;  %v1099_v49 = vadd.f32 %v1098_v36, %v1086_v60  ;;  %v1465_v60 = vperm.slane %v1463_v10, 0 }
 0x121   :  { %v1112_v0 = vadd.f32 %v1111_v39, %v1099_v49 }
 0x126   :  { %v1100_v61 = vpop.f32.mrf.mxu2  ;;  %v1152_v19 = vpop.f32.mrf.mxu0 }
 0x127   :  { %v1166_v21 = vpop.f32.mrf.mxu1  ;;  %v1113_v62 = vpop.f32.mrf.mxu3  ;;  %v1171_v44 = vadd.f32 %v1152_v19, %v2602_v1 }
 0x128   :  { %v1172_v54 = vadd.f32 %v1166_v21, %v1112_v0 }
 0x129   :  { %v1181_v6 = vadd.f32 %v1177_v2, %v1171_v44 }
 0x12a   :  { %v1182_v7 = vadd.f32 %v1178_v3, %v1172_v54 }
 0x12b   :  { %v1185_v14 = vmax.f32 %v1181_v6, 0.0  ;;  %v2508_v6 = vmov 8.0  }
 0x12c   :  { %v1186_v17 = vmax.f32 %v1182_v7, 0.0  ;;  %2345 = vrcp.f32 %v2508_v6 }
 0x12e   :  { %v1154_v4 = vpop.f32.mrf.mxu0 }
 0x12f   :  { %v1168_v5 = vpop.f32.mrf.mxu1  ;;  %v1173_v8 = vadd.f32 %v1154_v4, %v2602_v1  ;;  %v1226_v1 = vperm.slane %v1223_v24, 1 }
 0x130   :  { %v1174_v11 = vadd.f32 %v1168_v5, %v1112_v0 }
 0x131   :  { %v1183_v12 = vadd.f32 %v1177_v2, %v1173_v8 }
 0x132   :  { %v1184_v13 = vadd.f32 %v1178_v3, %v1174_v11  ;;  %v2346_v7 = vpop.eup %2345 }
 0x133   :  { %v1187_v18 = vmax.f32 %v1183_v12, 0.0  ;;  %v1487_v8 = vmul.f32 8.0, %v2346_v7  ;;  %vm1491_vm3 = vweird.f32 %v2346_v7 }
 0x134   :  { %v1188_v20 = vmax.f32 %v1184_v13, 0.0 }
 0x135   :  { %v1189_v22 = vpack.c.bf16 %v1187_v18, %v1185_v14  ;;  %v1488_v11 = vsub.f32 1.0, %v1487_v8 }
 0x136   :  { %v1190_v23 = vpack.c.bf16 %v1188_v20, %v1186_v17 }
 0x137   :  { %1397 = vmatmul.bf16.vlgmr.msra.gmra.mxu2 %v1189_v22  ;;  %1425 = vmatmul.bf16.vlgmr.msrb.gmra.mxu0 %v1189_v22  ;;  %v1489_v12 = vmul.f32 %v2346_v7, %v1488_v11 }
 0x138   :  { %1411 = vmatmul.bf16.vlgmr.msra.gmra.mxu3 %v1190_v23  ;;  %1439 = vmatmul.bf16.vlgmr.msrb.gmra.mxu1 %v1190_v23 }
 0x139   :  { %v1490_v13 = vadd.f32 %v2346_v7, %v1489_v12 }
 0x13b   :  { %v1492_v17 = vsel %vm1491_vm3, %v2346_v7, %v1490_v13 }
 0x1b4   :  { %v1426_v25 = vpop.f32.mrf.mxu0 }
 0x1b5   :  { %v1440_v26 = vpop.f32.mrf.mxu1  ;;  %v1427_v27 = vadd.f32 %v1426_v25, %v1226_v1 }
 0x1b7   :  { %v1441_v32 = vadd.f32 %v1440_v26, %v1427_v27 }
 0x1b9   :  { %v1446_v38 = vmax.f32 %v1441_v32, 0.0 }
 0x1ba   :  { %v1398_v28 = vpop.f32.mrf.mxu2 }
 0x1bb   :  { %v1412_v29 = vpop.f32.mrf.mxu3  ;;  %v1399_v34 = vadd.f32 %v1398_v28, %v1225_v30 }
 0x1bc   :  { %v1428_v31 = vpop.f32.mrf.mxu0 }
 0x1bd   :  { %v1429_v33 = vadd.f32 %v1428_v31, %v1226_v1  ;;  %v1442_v35 = vpop.f32.mrf.mxu1  ;;  %v1413_v42 = vadd.f32 %v1412_v29, %v1399_v34 }
 0x1bf   :  { %v1443_v37 = vadd.f32 %v1442_v35, %v1429_v33  ;;  %v1445_v48 = vmax.f32 %v1413_v42, 0.0 }
 0x1c1   :  { %v1448_v40 = vmax.f32 %v1443_v37, 0.0 }
 0x1c2   :  { %v1400_v41 = vpop.f32.mrf.mxu2 }
 0x1c3   :  { %v1401_v45 = vadd.f32 %v1400_v41, %v1225_v30  ;;  %v1450_v15 = vsub.f32 %v1446_v38, %v1448_v40  ;;  %v1414_v46 = vpop.f32.mrf.mxu3 }
 0x1c5   :  { %v1415_v16 = vadd.f32 %v1414_v46, %v1401_v45  ;;  %v1457_v47 = vrot.slane %v1450_v15, 4 }
 0x1c7   :  { %v1447_v9 = vmax.f32 %v1415_v16, 0.0  ;;  %v1458_v50 = vadd.f32 %v1457_v47, %v1450_v15 }
 0x1c9   :  { %v1449_v51 = vsub.f32 %v1445_v48, %v1447_v9  ;;  %v1459_v52 = vrot.slane %v1458_v50, 2 }
 0x1cb   :  { %v1451_v53 = vrot.slane %v1449_v51, 4  ;;  %v1460_v55 = vadd.f32 %v1459_v52, %v1458_v50 }
 0x1cd   :  { %v1452_v56 = vadd.f32 %v1451_v53, %v1449_v51  ;;  %v1461_v57 = vrot.slane %v1460_v55, 1 }
 0x1cf   :  { %v1453_v36 = vrot.slane %v1452_v56, 2  ;;  %v1462_v43 = vadd.f32 %v1461_v57, %v1460_v55 }
 0x1d1   :  { %v1454_v58 = vadd.f32 %v1453_v36, %v1452_v56  ;;  %v1470_v61 = vmul.f32 %v1466_v59, %v1462_v43 }
 0x1d3   :  { %v1455_v39 = vrot.slane %v1454_v58, 1  ;;  %v1473_v62 = vsel %vm1471_vm2, %v1470_v61, 0.0 }
 0x1d5   :  { %v1456_v49 = vadd.f32 %v1455_v39, %v1454_v58 }
 0x1d7   :  { %v1469_v19 = vmul.f32 %v1465_v60, %v1456_v49 }
 0x1d9   :  { %v1472_v21 = vsel %vm1471_vm2, %v1469_v19, 0.0 }
 0x1da   :  { %v1474_v63 = vadd.f32 %v1473_v62, %v1472_v21 }
 0x1dc   :  { %1475 = vadd.xlane.f32.xlu0 %v1474_v63 }
 0x24f   :  { %v1476_v0 = vpop.xlane.xlu0 %1475 }
 0x250   :  { %v1477_v44 = vrot.slane %v1476_v0, 4 }
 0x252   :  { %v1478_v2 = vadd.f32 %v1477_v44, %v1476_v0 }
 0x254   :  { %v1479_v54 = vrot.slane %v1478_v2, 2 }
 0x256   :  { %v1480_v3 = vadd.f32 %v1479_v54, %v1478_v2 }
 0x258   :  { %v1481_v4 = vrot.slane %v1480_v3, 1 }
 0x25a   :  { %v1482_v5 = vadd.f32 %v1481_v4, %v1480_v3 }
 0x25c   :  { %2332 = vpush %v1482_v5 }
 0x28d   :  { %s2333_s7 = spop %2332 }
 0x28e   :  { %v1484_v14 = vstv %s2333_s7 }
 0x28f   :  { %v1485_v18 = vsub.f32 0.0, %v1484_v14 }
 0x291   :  { %v1493_v20 = vmul.f32 %v1492_v17, %v1485_v18 }
 0x293   :  { %1495 = vst.msk [vmem:[#allocation11] sm:$0x1] %vm1494_vm4, %v1493_v20 }
 0x294   :  { %1506 = dma.vmem_to_hbm [thread:$0]  %s1502_s12, 16, %s1504_s15, [#allocation4]  }
 0x295   :  { %2497 = dma.done.wait [#allocation4], 16  }
 0x296   :  { %2498 = vsyncadd [#allocation4], 4294967280 }
 0x297   :  { %1511 = vsyncpa [#allocation3], 1 }
 0x298   :  { %1512 = vsyncpa [#allocation6], 1 }
 0x299   :  { %1513 = vsyncpa [#allocation9], 1 }
 0x29a   :  { %1514 = vsyncpa [#allocation4], 1 }

</bundles_post_ra>
